<compile_context>
chip_gen: v7x
topology: tpu7x:2x2x1
jax: 0.10.0
libtpu: 0.0.40
codegen_flags: <defaults>
</compile_context>

<pallas_src>
import functools
import math

import jax
import jax.numpy as jnp
import numpy as np
from jax.experimental import pallas as pl
from jax.experimental.pallas import tpu as pltpu


# =============================================================================
# Encoder kernel: fused one-hot embedding gather + projection + tanh
#                 + masked mean + per-batch ce source sum.
# Grid: (B, S // src_tile), src axis trailing ("arbitrary" reduction).
# =============================================================================
def _encoder_kernel(len_ref,                     # (B,) int32 scalar prefetch (SMEM)
                    ids_ref,                     # (1, B, ts) int32 src ids of this tile
                    emb_ref,                     # (V_src, E) bf16 table (VMEM resident)
                    w_ref, b_ref,                # (E, H) bf16, (1, H) f32
                    mb_ref, enc_ref, ce_ref,     # outputs
                    enc_acc, ce_acc):            # (1, H) f32 scratch accumulators
    b = pl.program_id(0)
    s = pl.program_id(1)
    ns = pl.num_programs(1)
    ts = mb_ref.shape[1]
    V = emb_ref.shape[0]

    # ---- one-hot embedding gather on the MXU (exact row select, no tiny DMAs).
    # TODO(synk): for large vocabularies (table does not fit VMEM) switch to a
    #             double-buffered row-DMA gather instead of the one-hot matmul.
    ids = ids_ref[0, pl.ds(b, 1), :]                                    # (1, ts)
    eq = jax.lax.broadcasted_iota(jnp.int32, (V, ts), 0) == ids         # (V, ts)
    onehot = jnp.where(eq, 1.0, 0.0).astype(emb_ref.dtype)
    emb = jax.lax.dot_general(onehot, emb_ref[...],
                              (((0,), (0,)), ((), ())),
                              preferred_element_type=jnp.float32)       # (ts, E)

    # ---- projection + tanh (bf16 x bf16 MXU matmul, f32 elementwise math).
    h = jnp.tanh(
        jnp.dot(emb.astype(w_ref.dtype), w_ref[...],
                preferred_element_type=jnp.float32) + b_ref[...])       # (ts, H) f32
    mb_ref[...] = h.astype(mb_ref.dtype)[None]

    # ---- fused reductions in f32 VMEM scratch, written once at the last tile.
    @pl.when(s == 0)
    def _init():
        enc_acc[...] = jnp.zeros(enc_acc.shape, enc_acc.dtype)
        ce_acc[...] = jnp.zeros(ce_acc.shape, ce_acc.dtype)

    pos = s * ts + jax.lax.broadcasted_iota(jnp.int32, (ts, 1), 0)
    h_valid = jnp.where(pos < len_ref[b], h, 0.0)
    enc_acc[...] += h_valid.sum(axis=0, keepdims=True)     # length-masked sum
    ce_acc[...] += h.sum(axis=0, keepdims=True)            # literal torch.sum

    @pl.when(s == ns - 1)
    def _finalize():
        denom = jnp.maximum(len_ref[b], 1).astype(jnp.float32)
        enc_ref[...] = (enc_acc[...] / denom)[None]
        ce_ref[...] = ce_acc[...][None]


def run_encoder(params, src_ids, lengths, *, src_tile=256):
    """Returns memory_bank (B,S,H) bf16, enc_state (B,H) f32, ce src sum (B,H) f32."""
    B, S = src_ids.shape
    V, E = params["emb_src"].shape
    H = params["w_enc"].shape[1]
    src_tile = min(src_tile, S)           # 256 fills the v6e/v7x MXU; use 128 on v5e
    assert S % src_tile == 0 and src_tile % 8 == 0
    nk = S // src_tile
    grid = (B, nk)

    # src ids re-laid out to (nk, B, ts) so each grid step sees a legal full block.
    ids_r = jnp.transpose(src_ids.astype(jnp.int32).reshape(B, nk, src_tile), (1, 0, 2))

    grid_spec = pltpu.PrefetchScalarGridSpec(
        num_scalar_prefetch=1,
        grid=grid,
        in_specs=[
            pl.BlockSpec((1, B, src_tile), lambda b, s, lens: (s, 0, 0)),   # src ids tile
            pl.BlockSpec((V, E), lambda b, s, lens: (0, 0)),                # emb_src
            pl.BlockSpec((E, H), lambda b, s, lens: (0, 0)),                # W_enc
            pl.BlockSpec((1, H), lambda b, s, lens: (0, 0)),                # b_enc
        ],
        out_specs=[
            pl.BlockSpec((1, src_tile, H), lambda b, s, lens: (b, s, 0)),   # memory_bank
            pl.BlockSpec((1, 1, H), lambda b, s, lens: (b, 0, 0)),          # enc_state
            pl.BlockSpec((1, 1, H), lambda b, s, lens: (b, 0, 0)),          # ce src sum
        ],
        scratch_shapes=[
            pltpu.VMEM((1, H), jnp.float32),     # enc_state accumulator
            pltpu.VMEM((1, H), jnp.float32),     # ce accumulator
        ],
    )
    out_shape = [
        jax.ShapeDtypeStruct((B, S, H), jnp.bfloat16),   # bf16 storage: halves HBM traffic
        jax.ShapeDtypeStruct((B, 1, H), jnp.float32),
        jax.ShapeDtypeStruct((B, 1, H), jnp.float32),
    ]
    call = pl.pallas_call(
        _encoder_kernel,
        grid_spec=grid_spec,
        out_shape=out_shape,
        compiler_params=pltpu.CompilerParams(
            dimension_semantics=("parallel", "arbitrary"),   # B feeds both v7x TCs
            vmem_limit_bytes=48 * 1024 * 1024,               # within the 64 MiB v7x budget
        ),
    )
    mem, enc_state, ce_b = call(lengths.astype(jnp.int32), ids_r,
                                params["emb_src"], params["w_enc"], params["b_enc"])
    return mem, enc_state[:, 0, :], ce_b[:, 0, :]


# =============================================================================
# Decoder kernel: fused one-hot dec_in embedding gather + flash-style attention
# over memory_bank + decoder output projection + attention weights + emb sum.
# Grid: (B, S // src_tile), src axis trailing ("arbitrary" reduction).
# Layout inside the kernel: src on sublanes, tgt on lanes (padded to 128).
# =============================================================================
def _decoder_kernel(len_ref,                         # (B,) int32 scalar prefetch
                    ids_ref,                         # (B, tgt_lanes) int32, -1 = pad
                    emb_ref,                         # (V_tgt, H) bf16 table
                    mb_ref,                          # (1, tk, H) bf16 memory_bank tile
                    wc_ref, wq_ref, bo_ref,          # (H,H) bf16, (H,H) bf16, (1,H) f32
                    dec_ref, attn_ref, dsum_ref,     # outputs
                    q_buf, qproj_ref, m_ref, l_ref, acc_ref, mtile_ref,   # scratch
                    *, nk):
    b = pl.program_id(0)
    k = pl.program_id(1)
    tql, H = q_buf.shape
    tk = mb_ref.shape[1]
    V = emb_ref.shape[0]
    scale = 1.0 / math.sqrt(H)

    # ---- prologue (once per batch row): one-hot embedding gather, hoisted q@W_q,
    #      ce-path target sum, flash state init.
    @pl.when(k == 0)
    def _prologue():
        ids = ids_ref[pl.ds(b, 1), :]                                       # (1, tql)
        eq = jax.lax.broadcasted_iota(jnp.int32, (V, tql), 0) == ids        # (V, tql)
        onehot = jnp.where(eq, 1.0, 0.0).astype(emb_ref.dtype)              # -1 pads -> 0 rows
        q = jax.lax.dot_general(onehot, emb_ref[...],
                                (((0,), (0,)), ((), ())),
                                preferred_element_type=jnp.float32)         # (tql, H)
        q_buf[...] = q.astype(q_buf.dtype)
        # ce path: sum over (real) target positions of decoder-input embeddings.
        dsum_ref[...] = jnp.sum(q, axis=0, keepdims=True)[None]
        # q @ W_q is loop-independent: hoisted here so it overlaps the src loop.
        qproj_ref[...] = jnp.dot(q_buf[...], wq_ref[...],
                                 preferred_element_type=jnp.float32)
        m_ref[...] = jnp.full(m_ref.shape, -1e30, m_ref.dtype)
        l_ref[...] = jnp.zeros(l_ref.shape, l_ref.dtype)
        acc_ref[...] = jnp.zeros(acc_ref.shape, acc_ref.dtype)

    # ---- scores for this src tile: src on sublanes, tgt on lanes -> (tk, tql)
    kv = mb_ref[0]                                                          # (tk, H) bf16
    s = jax.lax.dot_general(kv, q_buf[...], (((1,), (1,)), ((), ())),
                            preferred_element_type=jnp.float32) * scale
    key_pos = k * tk + jax.lax.broadcasted_iota(jnp.int32, (tk, 1), 0)
    s = jnp.where(key_pos < len_ref[b], s, -1e30)                           # length mask

    # ---- online softmax (flash-style) context accumulation
    m_prev = m_ref[...]                                                     # (1, tql)
    m_new = jnp.maximum(m_prev, jnp.max(s, axis=0, keepdims=True))
    alpha = jnp.exp(m_prev - m_new)
    p = jnp.exp(s - m_new)                                                  # (tk, tql) f32
    l_ref[...] = alpha * l_ref[...] + jnp.sum(p, axis=0, keepdims=True)
    # TODO(synk): cast p to bf16 here for a full-rate MXU accumulate at production sizes.
    acc_ref[...] = alpha * acc_ref[...] + jax.lax.dot_general(
        kv.astype(jnp.float32), p, (((0,), (0,)), ((), ())),
        preferred_element_type=jnp.float32)                                 # (H, tql)
    m_ref[...] = m_new

    # stash un-normalized per-tile weights + the running max they were built with;
    # the epilogue rescales each tile (nk*tql exps instead of S*tql).
    start = pl.multiple_of(k * tk, tk)
    attn_ref[:, pl.ds(start, tk), :] = p[None]
    mtile_ref[pl.ds(k, 1), :] = m_new

    # ---- epilogue: finalize dec_out and normalize the attention weights.
    @pl.when(k == nk - 1)
    def _epilogue():
        l = jnp.maximum(l_ref[...], 1e-30)       # guard: length-0 rows stay finite
        inv_l = 1.0 / l                          # exact: attns are a model output
        ctx_t = acc_ref[...] * inv_l                                        # (H, tql)
        ctx_part = jax.lax.dot_general(
            ctx_t, wc_ref[...].astype(jnp.float32),
            (((0,), (0,)), ((), ())), preferred_element_type=jnp.float32)   # (tql, H)
        dec_ref[...] = jnp.tanh(ctx_part + qproj_ref[...] + bo_ref[...])[None]
        m_fin = m_ref[...]
        for kk in range(nk):                     # static unroll, nk = S // src_tile
            corr = jnp.exp(mtile_ref[kk:kk + 1, :] - m_fin) * inv_l         # (1, tql)
            attn_ref[:, kk * tk:(kk + 1) * tk, :] *= corr[None]


def run_decoder(params, dec_in_ids, memory_bank, lengths, *, src_tile=256, tgt_lanes=128):
    B, S, H = memory_bank.shape
    T = dec_in_ids.shape[1]
    Vt = params["emb_tgt"].shape[0]
    src_tile = min(src_tile, S)
    assert S % src_tile == 0 and src_tile % 8 == 0
    # TODO(synk): tile the tgt axis (extra grid dim) when tgt_len - 1 > 128.
    assert T <= tgt_lanes, "tgt_len - 1 must fit in one lane-padded query tile"
    nk = S // src_tile
    grid = (B, nk)

    # dec_in ids padded to the 128-lane query tile; -1 marks pad rows (zero embedding).
    ids_pad = jnp.full((B, tgt_lanes), -1, jnp.int32)
    ids_pad = ids_pad.at[:, :T].set(dec_in_ids.astype(jnp.int32))

    grid_spec = pltpu.PrefetchScalarGridSpec(
        num_scalar_prefetch=1,
        grid=grid,
        in_specs=[
            pl.BlockSpec((B, tgt_lanes), lambda b, k, lens: (0, 0)),         # dec_in ids
            pl.BlockSpec((Vt, H), lambda b, k, lens: (0, 0)),                # emb_tgt
            pl.BlockSpec((1, src_tile, H), lambda b, k, lens: (b, k, 0)),    # memory_bank
            pl.BlockSpec((H, H), lambda b, k, lens: (0, 0)),                 # W_c
            pl.BlockSpec((H, H), lambda b, k, lens: (0, 0)),                 # W_q
            pl.BlockSpec((1, H), lambda b, k, lens: (0, 0)),                 # b_out
        ],
        out_specs=[
            pl.BlockSpec((1, tgt_lanes, H), lambda b, k, lens: (b, 0, 0)),   # dec_out
            pl.BlockSpec((1, S, tgt_lanes), lambda b, k, lens: (b, 0, 0)),   # attns
            pl.BlockSpec((1, 1, H), lambda b, k, lens: (b, 0, 0)),           # dec emb sum
        ],
        scratch_shapes=[
            pltpu.VMEM((tgt_lanes, H), jnp.bfloat16),    # q_buf (dec_in embeddings)
            pltpu.VMEM((tgt_lanes, H), jnp.float32),     # hoisted q @ W_q
            pltpu.VMEM((1, tgt_lanes), jnp.float32),     # running max
            pltpu.VMEM((1, tgt_lanes), jnp.float32),     # running denominator
            pltpu.VMEM((H, tgt_lanes), jnp.float32),     # ctx accumulator (transposed)
            pltpu.VMEM((nk, tgt_lanes), jnp.float32),    # per-tile running max
        ],
    )
    out_shape = [
        jax.ShapeDtypeStruct((B, tgt_lanes, H), jnp.float32),
        jax.ShapeDtypeStruct((B, S, tgt_lanes), jnp.float32),
        jax.ShapeDtypeStruct((B, 1, H), jnp.float32),
    ]
    call = pl.pallas_call(
        functools.partial(_decoder_kernel, nk=nk),
        grid_spec=grid_spec,
        out_shape=out_shape,
        compiler_params=pltpu.CompilerParams(
            dimension_semantics=("parallel", "arbitrary"),
            vmem_limit_bytes=48 * 1024 * 1024,
        ),
    )
    dec_pad, attn_t, dsum = call(lengths.astype(jnp.int32), ids_pad,
                                 params["emb_tgt"], memory_bank,
                                 params["w_c"], params["w_q"], params["b_out"])
    return dec_pad, attn_t, dsum[:, 0, :]


# =============================================================================
# NMTModel.forward wrapper:   src (S, B, 1), tgt (tgt_len, B, 1), lengths (B,)
# Returns (dec_out (T, B, H), {"std": attns (T, B, S)}, new_cost scalar).
# =============================================================================
def nmt_forward(params, src, tgt, lengths, *, src_tile=256):
    src_ids = jnp.transpose(src[:, :, 0]).astype(jnp.int32)     # (B, S) relayout in XLA
    dec_in = jnp.transpose(tgt[:-1, :, 0]).astype(jnp.int32)    # (B, T)  dec_in = tgt[:-1]
    T = dec_in.shape[1]
    H = params["w_enc"].shape[1]

    memory_bank, _enc_state, ce_src_b = run_encoder(params, src_ids, lengths,
                                                    src_tile=src_tile)
    # decoder.init_state(src, memory_bank, enc_state): this minimal attention
    # decoder is stateless; enc_state (masked mean) is computed but unused.
    dec_pad, attn_t, dec_emb_sum = run_decoder(params, dec_in, memory_bank, lengths,
                                               src_tile=src_tile)

    dec_out = jnp.transpose(dec_pad[:, :T, :], (1, 0, 2))           # (T, B, H)
    # TODO(synk): emit attn with S on the lane axis to avoid this minor-dim transpose.
    attns = {"std": jnp.transpose(attn_t[:, :, :T], (2, 0, 1))}     # (T, B, S)

    # ce_layer + hamming distance: O(B*H) epilogue, left to plain XLA.
    c_s = jnp.sum(ce_src_b, axis=0)                                 # (H,)
    v_s = c_s @ params["w_ce"] + params["b_ce"][0]                  # (H,)
    v_t = dec_emb_sum                                               # (B, H)
    new_cost = jnp.mean(jnp.sum(jnp.abs(v_s[None, :] - v_t), axis=-1) / H)
    return dec_out, attns, new_cost


# -------------------------- pure-JAX reference -------------------------------
def nmt_forward_reference(params, src, tgt, lengths):
    f32 = jnp.float32
    emb_src = params["emb_src"].astype(f32)
    emb_tgt = params["emb_tgt"].astype(f32)
    w_enc = params["w_enc"].astype(f32)
    w_c = params["w_c"].astype(f32)
    w_q = params["w_q"].astype(f32)

    src_ids = jnp.transpose(src[:, :, 0]).astype(jnp.int32)        # (B, S)
    dec_in = jnp.transpose(tgt[:-1, :, 0]).astype(jnp.int32)       # (B, T)
    B, S = src_ids.shape
    H = w_enc.shape[1]

    emb = emb_src[src_ids]                                         # (B, S, E)
    mem = jnp.tanh(emb @ w_enc + params["b_enc"][0])               # (B, S, H) f32
    valid = jnp.arange(S)[None, :] < lengths[:, None]              # (B, S)
    enc_state = (mem * valid[..., None]).sum(1) / lengths[:, None].astype(f32)
    mem_bf = mem.astype(jnp.bfloat16).astype(f32)    # kernel stores memory_bank in bf16

    q = emb_tgt[dec_in]                                            # (B, T, H)
    scores = jnp.einsum("bth,bsh->bts", q, mem_bf) * (1.0 / math.sqrt(H))
    scores = jnp.where(valid[:, None, :], scores, -1e30)
    attn = jax.nn.softmax(scores, axis=-1)                         # (B, T, S)
    ctx = jnp.einsum("bts,bsh->bth", attn, mem_bf)
    dec_out = jnp.tanh(ctx @ w_c + q @ w_q + params["b_out"][0])

    c_s = mem.sum(axis=(0, 1))
    v_s = c_s @ params["w_ce"] + params["b_ce"][0]
    v_t = q.sum(axis=1)
    new_cost = jnp.mean(jnp.sum(jnp.abs(v_s[None, :] - v_t), axis=-1) / H)
    return (jnp.transpose(dec_out, (1, 0, 2)),
            jnp.transpose(attn, (1, 0, 2)),
            new_cost,
            enc_state)


if __name__ == "__main__":
    B, S, TGT_LEN = 2, 32, 9
    H = E = 128
    V_SRC = V_TGT = 64
    SRC_TILE = 16          # small-shape test: 2 src tiles; production default is 256
    f32, bf16 = jnp.float32, jnp.bfloat16

    ks = jax.random.split(jax.random.PRNGKey(0), 11)
    params = {
        "emb_src": (0.5 * jax.random.normal(ks[0], (V_SRC, E), f32)).astype(bf16),
        "w_enc":   (0.05 * jax.random.normal(ks[1], (E, H), f32)).astype(bf16),
        "b_enc":   0.05 * jax.random.normal(ks[2], (1, H), f32),
        "emb_tgt": (0.5 * jax.random.normal(ks[3], (V_TGT, H), f32)).astype(bf16),
        "w_c":     (0.05 * jax.random.normal(ks[4], (H, H), f32)).astype(bf16),
        "w_q":     (0.05 * jax.random.normal(ks[5], (H, H), f32)).astype(bf16),
        "b_out":   0.05 * jax.random.normal(ks[6], (1, H), f32),
        "w_ce":    0.05 * jax.random.normal(ks[7], (H, H), f32),
        "b_ce":    0.05 * jax.random.normal(ks[8], (1, H), f32),
    }

    lengths = jnp.array([S, 23], dtype=jnp.int32)                  # pre-padding src lengths
    src = jax.random.randint(ks[9], (S, B, 1), 1, V_SRC, dtype=jnp.int32)
    pos = jnp.arange(S)[:, None, None]
    src = jnp.where(pos < lengths[None, :, None], src, 0)          # token 0 == <pad>
    tgt = jax.random.randint(ks[10], (TGT_LEN, B, 1), 1, V_TGT, dtype=jnp.int32)

    fwd = jax.jit(nmt_forward, static_argnames=("src_tile",))
    dec_out, attns, new_cost = fwd(params, src, tgt, lengths, src_tile=SRC_TILE)
    jax.block_until_ready((dec_out, attns["std"], new_cost))

    # ---- verify against the pure-JAX reference of the same minimal model ----
    ref_dec, ref_attn, ref_cost, ref_enc = nmt_forward_reference(params, src, tgt, lengths)
    np.testing.assert_allclose(np.asarray(dec_out), np.asarray(ref_dec), rtol=1e-2, atol=2e-3)
    np.testing.assert_allclose(np.asarray(attns["std"]), np.asarray(ref_attn), rtol=1e-2, atol=2e-3)
    np.testing.assert_allclose(float(new_cost), float(ref_cost), rtol=1e-2, atol=2e-3)

    # encoder-internal state (decoder init_state input) check
    src_ids = jnp.transpose(src[:, :, 0])
    _, enc_state_k, _ = run_encoder(params, src_ids, lengths, src_tile=SRC_TILE)
    np.testing.assert_allclose(np.asarray(enc_state_k), np.asarray(ref_enc),
                               rtol=1e-2, atol=2e-3)

    print("KERNEL_OK")
</pallas_src>

<mosaic_0001>
module attributes {stable_mosaic.version = 11 : i64} {
  func.func @_encoder_kernel(%arg0: i32, %arg1: i32, %arg2: memref<2xi32, #tpu.memory_space<smem>>, %arg3: memref<1x2x16xi32, #tpu.memory_space<vmem>>, %arg4: memref<64x128xbf16, #tpu.memory_space<vmem>>, %arg5: memref<128x128xbf16, #tpu.memory_space<vmem>>, %arg6: memref<1x128xf32, #tpu.memory_space<vmem>>, %arg7: memref<1x16x128xbf16, #tpu.memory_space<vmem>>, %arg8: memref<1x1x128xf32, #tpu.memory_space<vmem>>, %arg9: memref<1x1x128xf32, #tpu.memory_space<vmem>>, %arg10: memref<1x128xf32, #tpu.memory_space<vmem>>, %arg11: memref<1x128xf32, #tpu.memory_space<vmem>>) attributes {dimension_semantics = [#tpu.dimension_semantics<parallel>, #tpu.dimension_semantics<arbitrary>], iteration_bounds = array<i64: 2, 2>, scalar_prefetch = 1 : i64, scratch_operands = 2 : i64, tpu.core_type = #tpu.core_type<tc>, window_params = [{transform_indices = @transform_0, window_bounds = array<i64: 1, 2, 16>}, {pipeline_mode = #tpu.pipeline_mode<synchronous>, transform_indices = @transform_1, window_bounds = array<i64: 64, 128>}, {pipeline_mode = #tpu.pipeline_mode<synchronous>, transform_indices = @transform_2, window_bounds = array<i64: 128, 128>}, {pipeline_mode = #tpu.pipeline_mode<synchronous>, transform_indices = @transform_3, window_bounds = array<i64: 1, 128>}, {transform_indices = @transform_4, window_bounds = array<i64: 1, 16, 128>}, {transform_indices = @transform_5, window_bounds = array<i64: 1, 1, 128>}, {transform_indices = @transform_6, window_bounds = array<i64: 1, 1, 128>}]} {
    %c0 = arith.constant 0 : index
    %0 = arith.index_cast %arg0 : i32 to index
    %c0_0 = arith.constant 0 : index
    %1 = vector.load %arg3[%c0, %0, %c0_0] : memref<1x2x16xi32, #tpu.memory_space<vmem>>, vector<1x1x16xi32>
    %2 = vector.shape_cast %1 : vector<1x1x16xi32> to vector<1x16xi32>
    %3 = tpu.iota {dimensions = array<i32: 0>} : vector<64x16xi32>
    %4 = vector.broadcast %2 : vector<1x16xi32> to vector<64x16xi32>
    %5 = arith.cmpi eq, %3, %4 : vector<64x16xi32>
    %cst = arith.constant 1.000000e+00 : f32
    %cst_1 = arith.constant 0.000000e+00 : f32
    %6 = vector.broadcast %cst : f32 to vector<64x16xf32>
    %7 = vector.broadcast %cst_1 : f32 to vector<64x16xf32>
    %8 = arith.select %5, %6, %7 : vector<64x16xi1>, vector<64x16xf32>
    %9 = arith.truncf %8 : vector<64x16xf32> to vector<64x16xbf16>
    %c0_2 = arith.constant 0 : index
    %c0_3 = arith.constant 0 : index
    %10 = vector.load %arg4[%c0_2, %c0_3] : memref<64x128xbf16, #tpu.memory_space<vmem>>, vector<64x128xbf16>
    %cst_4 = arith.constant dense<0.000000e+00> : vector<16x128xf32>
    %11 = tpu.matmul %9, %10, %cst_4 {dimension_numbers = #tpu.dot_dimension_numbers<[0], [0], [1], [1], [0, 1, 1, 1], [], []>} : vector<64x16xbf16>, vector<64x128xbf16>, vector<16x128xf32> -> vector<16x128xf32>
    %12 = arith.truncf %11 : vector<16x128xf32> to vector<16x128xbf16>
    %c0_5 = arith.constant 0 : index
    %c0_6 = arith.constant 0 : index
    %13 = vector.load %arg5[%c0_5, %c0_6] : memref<128x128xbf16, #tpu.memory_space<vmem>>, vector<128x128xbf16>
    %cst_7 = arith.constant dense<0.000000e+00> : vector<16x128xf32>
    %14 = tpu.matmul %12, %13, %cst_7 {dimension_numbers = #tpu.dot_dimension_numbers<[1], [0], [0], [1], [0, 0, 1, 1], [], []>} : vector<16x128xbf16>, vector<128x128xbf16>, vector<16x128xf32> -> vector<16x128xf32>
    %c0_8 = arith.constant 0 : index
    %c0_9 = arith.constant 0 : index
    %15 = vector.load %arg6[%c0_8, %c0_9] : memref<1x128xf32, #tpu.memory_space<vmem>>, vector<1x128xf32>
    %16 = vector.broadcast %15 : vector<1x128xf32> to vector<16x128xf32>
    %17 = arith.addf %14, %16 : vector<16x128xf32>
    %18 = math.tanh %17 : vector<16x128xf32>
    %19 = arith.truncf %18 : vector<16x128xf32> to vector<16x128xbf16>
    %20 = vector.shape_cast %19 : vector<16x128xbf16> to vector<1x16x128xbf16>
    %c0_10 = arith.constant 0 : index
    %c0_11 = arith.constant 0 : index
    %c0_12 = arith.constant 0 : index
    %21 = vector.load %arg7[%c0_10, %c0_11, %c0_12] : memref<1x16x128xbf16, #tpu.memory_space<vmem>>, vector<1x16x128xbf16>
    tpu.vector_store %arg7[%c0_10, %c0_11, %c0_12], %20 {strides = array<i32>} : memref<1x16x128xbf16, #tpu.memory_space<vmem>>, vector<1x16x128xbf16>,
    %c0_i32 = arith.constant 0 : i32
    %22 = arith.cmpi eq, %arg1, %c0_i32 : i32
    %23 = arith.extui %22 : i1 to i32
    %c0_i32_13 = arith.constant 0 : i32
    %24 = arith.cmpi ne, %23, %c0_i32_13 : i32
    scf.if %24 {
      %cst_26 = arith.constant 0.000000e+00 : f32
      %50 = vector.broadcast %cst_26 : f32 to vector<1x128xf32>
      %c0_27 = arith.constant 0 : index
      %c0_28 = arith.constant 0 : index
      %51 = vector.load %arg10[%c0_27, %c0_28] : memref<1x128xf32, #tpu.memory_space<vmem>>, vector<1x128xf32>
      tpu.vector_store %arg10[%c0_27, %c0_28], %50 {strides = array<i32>} : memref<1x128xf32, #tpu.memory_space<vmem>>, vector<1x128xf32>,
      %cst_29 = arith.constant 0.000000e+00 : f32
      %52 = vector.broadcast %cst_29 : f32 to vector<1x128xf32>
      %c0_30 = arith.constant 0 : index
      %c0_31 = arith.constant 0 : index
      %53 = vector.load %arg11[%c0_30, %c0_31] : memref<1x128xf32, #tpu.memory_space<vmem>>, vector<1x128xf32>
      tpu.vector_store %arg11[%c0_30, %c0_31], %52 {strides = array<i32>} : memref<1x128xf32, #tpu.memory_space<vmem>>, vector<1x128xf32>,
    } else {
    }
    %c16_i32 = arith.constant 16 : i32
    %25 = arith.muli %arg1, %c16_i32 : i32
    %26 = tpu.iota {dimensions = array<i32: 0>} : vector<16x1xi32>
    %27 = vector.broadcast %25 : i32 to vector<16x1xi32>
    %28 = arith.addi %27, %26 : vector<16x1xi32>
    %29 = arith.index_cast %arg0 : i32 to index
    %30 = memref.load %arg2[%29] : memref<2xi32, #tpu.memory_space<smem>>
    %31 = vector.broadcast %30 : i32 to vector<16x1xi32>
    %32 = arith.cmpi slt, %28, %31 : vector<16x1xi32>
    %cst_14 = arith.constant 0.000000e+00 : f32
    %33 = vector.shape_cast %32 : vector<16x1xi1> to vector<16x1xi1>
    %34 = vector.broadcast %33 : vector<16x1xi1> to vector<16x128xi1>
    %35 = vector.broadcast %cst_14 : f32 to vector<16x128xf32>
    %36 = arith.select %34, %18, %35 : vector<16x128xi1>, vector<16x128xf32>
    %c0_15 = arith.constant 0 : index
    %c0_16 = arith.constant 0 : index
    %37 = vector.load %arg10[%c0_15, %c0_16] : memref<1x128xf32, #tpu.memory_space<vmem>>, vector<1x128xf32>
    %cst_17 = arith.constant dense<0.000000e+00> : vector<128xf32>
    %38 = vector.multi_reduction <add>, %36, %cst_17 [0] : vector<16x128xf32> to vector<128xf32>
    %39 = vector.shape_cast %38 : vector<128xf32> to vector<1x128xf32>
    %40 = arith.addf %37, %39 : vector<1x128xf32>
    %c0_18 = arith.constant 0 : index
    %c0_19 = arith.constant 0 : index
    %41 = vector.load %arg10[%c0_18, %c0_19] : memref<1x128xf32, #tpu.memory_space<vmem>>, vector<1x128xf32>
    tpu.vector_store %arg10[%c0_18, %c0_19], %40 {strides = array<i32>} : memref<1x128xf32, #tpu.memory_space<vmem>>, vector<1x128xf32>,
    %c0_20 = arith.constant 0 : index
    %c0_21 = arith.constant 0 : index
    %42 = vector.load %arg11[%c0_20, %c0_21] : memref<1x128xf32, #tpu.memory_space<vmem>>, vector<1x128xf32>
    %cst_22 = arith.constant dense<0.000000e+00> : vector<128xf32>
    %43 = vector.multi_reduction <add>, %18, %cst_22 [0] : vector<16x128xf32> to vector<128xf32>
    %44 = vector.shape_cast %43 : vector<128xf32> to vector<1x128xf32>
    %45 = arith.addf %42, %44 : vector<1x128xf32>
    %c0_23 = arith.constant 0 : index
    %c0_24 = arith.constant 0 : index
    %46 = vector.load %arg11[%c0_23, %c0_24] : memref<1x128xf32, #tpu.memory_space<vmem>>, vector<1x128xf32>
    tpu.vector_store %arg11[%c0_23, %c0_24], %45 {strides = array<i32>} : memref<1x128xf32, #tpu.memory_space<vmem>>, vector<1x128xf32>,
    %c1_i32 = arith.constant 1 : i32
    %47 = arith.cmpi eq, %arg1, %c1_i32 : i32
    %48 = arith.extui %47 : i1 to i32
    %c0_i32_25 = arith.constant 0 : i32
    %49 = arith.cmpi ne, %48, %c0_i32_25 : i32
    scf.if %49 {
      %50 = arith.index_cast %arg0 : i32 to index
      %51 = memref.load %arg2[%50] : memref<2xi32, #tpu.memory_space<smem>>
      %c1_i32_26 = arith.constant 1 : i32
      %52 = arith.maxsi %51, %c1_i32_26 : i32
      %53 = arith.sitofp %52 : i32 to f32
      %c0_27 = arith.constant 0 : index
      %c0_28 = arith.constant 0 : index
      %54 = vector.load %arg10[%c0_27, %c0_28] : memref<1x128xf32, #tpu.memory_space<vmem>>, vector<1x128xf32>
      %55 = vector.broadcast %53 : f32 to vector<1x128xf32>
      %56 = arith.divf %54, %55 : vector<1x128xf32>
      %57 = vector.shape_cast %56 : vector<1x128xf32> to vector<1x1x128xf32>
      %c0_29 = arith.constant 0 : index
      %c0_30 = arith.constant 0 : index
      %c0_31 = arith.constant 0 : index
      %58 = vector.load %arg8[%c0_29, %c0_30, %c0_31] : memref<1x1x128xf32, #tpu.memory_space<vmem>>, vector<1x1x128xf32>
      tpu.vector_store %arg8[%c0_29, %c0_30, %c0_31], %57 {strides = array<i32>} : memref<1x1x128xf32, #tpu.memory_space<vmem>>, vector<1x1x128xf32>,
      %c0_32 = arith.constant 0 : index
      %c0_33 = arith.constant 0 : index
      %59 = vector.load %arg11[%c0_32, %c0_33] : memref<1x128xf32, #tpu.memory_space<vmem>>, vector<1x128xf32>
      %60 = vector.shape_cast %59 : vector<1x128xf32> to vector<1x1x128xf32>
      %c0_34 = arith.constant 0 : index
      %c0_35 = arith.constant 0 : index
      %c0_36 = arith.constant 0 : index
      %61 = vector.load %arg9[%c0_34, %c0_35, %c0_36] : memref<1x1x128xf32, #tpu.memory_space<vmem>>, vector<1x1x128xf32>
      tpu.vector_store %arg9[%c0_34, %c0_35, %c0_36], %60 {strides = array<i32>} : memref<1x1x128xf32, #tpu.memory_space<vmem>>, vector<1x1x128xf32>,
    } else {
    }
    return
  }
  func.func @transform_0(%arg0: i32, %arg1: i32, %arg2: memref<2xi32, #tpu.memory_space<smem>>) -> (i32, i32, i32) {
    %c0_i32 = arith.constant 0 : i32
    %c0_i32_0 = arith.constant 0 : i32
    %c0_i32_1 = arith.constant 0 : i32
    return %arg1, %c0_i32, %c0_i32_0 : i32, i32, i32
  }
  func.func @transform_1(%arg0: i32, %arg1: i32, %arg2: memref<2xi32, #tpu.memory_space<smem>>) -> (i32, i32) {
    %c0_i32 = arith.constant 0 : i32
    %c0_i32_0 = arith.constant 0 : i32
    %c0_i32_1 = arith.constant 0 : i32
    return %c0_i32, %c0_i32_0 : i32, i32
  }
  func.func @transform_2(%arg0: i32, %arg1: i32, %arg2: memref<2xi32, #tpu.memory_space<smem>>) -> (i32, i32) {
    %c0_i32 = arith.constant 0 : i32
    %c0_i32_0 = arith.constant 0 : i32
    %c0_i32_1 = arith.constant 0 : i32
    return %c0_i32, %c0_i32_0 : i32, i32
  }
  func.func @transform_3(%arg0: i32, %arg1: i32, %arg2: memref<2xi32, #tpu.memory_space<smem>>) -> (i32, i32) {
    %c0_i32 = arith.constant 0 : i32
    %c0_i32_0 = arith.constant 0 : i32
    %c0_i32_1 = arith.constant 0 : i32
    return %c0_i32, %c0_i32_0 : i32, i32
  }
  func.func @transform_4(%arg0: i32, %arg1: i32, %arg2: memref<2xi32, #tpu.memory_space<smem>>) -> (i32, i32, i32) {
    %c0_i32 = arith.constant 0 : i32
    %c0_i32_0 = arith.constant 0 : i32
    return %arg0, %arg1, %c0_i32 : i32, i32, i32
  }
  func.func @transform_5(%arg0: i32, %arg1: i32, %arg2: memref<2xi32, #tpu.memory_space<smem>>) -> (i32, i32, i32) {
    %c0_i32 = arith.constant 0 : i32
    %c0_i32_0 = arith.constant 0 : i32
    %c0_i32_1 = arith.constant 0 : i32
    return %arg0, %c0_i32, %c0_i32_0 : i32, i32, i32
  }
  func.func @transform_6(%arg0: i32, %arg1: i32, %arg2: memref<2xi32, #tpu.memory_space<smem>>) -> (i32, i32, i32) {
    %c0_i32 = arith.constant 0 : i32
    %c0_i32_0 = arith.constant 0 : i32
    %c0_i32_1 = arith.constant 0 : i32
    return %arg0, %c0_i32, %c0_i32_0 : i32, i32, i32
  }
}

module attributes {stable_mosaic.version = 11 : i64} {
  func.func @_decoder_kernel(%arg0: i32, %arg1: i32, %arg2: memref<2xi32, #tpu.memory_space<smem>>, %arg3: memref<2x128xi32, #tpu.memory_space<vmem>>, %arg4: memref<64x128xbf16, #tpu.memory_space<vmem>>, %arg5: memref<1x16x128xbf16, #tpu.memory_space<vmem>>, %arg6: memref<128x128xbf16, #tpu.memory_space<vmem>>, %arg7: memref<128x128xbf16, #tpu.memory_space<vmem>>, %arg8: memref<1x128xf32, #tpu.memory_space<vmem>>, %arg9: memref<1x128x128xf32, #tpu.memory_space<vmem>>, %arg10: memref<1x32x128xf32, #tpu.memory_space<vmem>>, %arg11: memref<1x1x128xf32, #tpu.memory_space<vmem>>, %arg12: memref<128x128xbf16, #tpu.memory_space<vmem>>, %arg13: memref<128x128xf32, #tpu.memory_space<vmem>>, %arg14: memref<1x128xf32, #tpu.memory_space<vmem>>, %arg15: memref<1x128xf32, #tpu.memory_space<vmem>>, %arg16: memref<128x128xf32, #tpu.memory_space<vmem>>, %arg17: memref<2x128xf32, #tpu.memory_space<vmem>>) attributes {dimension_semantics = [#tpu.dimension_semantics<parallel>, #tpu.dimension_semantics<arbitrary>], iteration_bounds = array<i64: 2, 2>, scalar_prefetch = 1 : i64, scratch_operands = 6 : i64, tpu.core_type = #tpu.core_type<tc>, window_params = [{pipeline_mode = #tpu.pipeline_mode<synchronous>, transform_indices = @transform_0, window_bounds = array<i64: 2, 128>}, {pipeline_mode = #tpu.pipeline_mode<synchronous>, transform_indices = @transform_1, window_bounds = array<i64: 64, 128>}, {transform_indices = @transform_2, window_bounds = array<i64: 1, 16, 128>}, {pipeline_mode = #tpu.pipeline_mode<synchronous>, transform_indices = @transform_3, window_bounds = array<i64: 128, 128>}, {pipeline_mode = #tpu.pipeline_mode<synchronous>, transform_indices = @transform_4, window_bounds = array<i64: 128, 128>}, {pipeline_mode = #tpu.pipeline_mode<synchronous>, transform_indices = @transform_5, window_bounds = array<i64: 1, 128>}, {transform_indices = @transform_6, window_bounds = array<i64: 1, 128, 128>}, {transform_indices = @transform_7, window_bounds = array<i64: 1, 32, 128>}, {transform_indices = @transform_8, window_bounds = array<i64: 1, 1, 128>}]} {
    %c0_i32 = arith.constant 0 : i32
    %0 = arith.cmpi eq, %arg1, %c0_i32 : i32
    %1 = arith.extui %0 : i1 to i32
    %c0_i32_0 = arith.constant 0 : i32
    %2 = arith.cmpi ne, %1, %c0_i32_0 : i32
    scf.if %2 {
      %54 = arith.index_cast %arg0 : i32 to index
      %c0_27 = arith.constant 0 : index
      %55 = vector.load %arg3[%54, %c0_27] : memref<2x128xi32, #tpu.memory_space<vmem>>, vector<1x128xi32>
      %56 = tpu.iota {dimensions = array<i32: 0>} : vector<64x128xi32>
      %57 = vector.broadcast %55 : vector<1x128xi32> to vector<64x128xi32>
      %58 = arith.cmpi eq, %56, %57 : vector<64x128xi32>
      %cst_28 = arith.constant 1.000000e+00 : f32
      %cst_29 = arith.constant 0.000000e+00 : f32
      %59 = vector.broadcast %cst_28 : f32 to vector<64x128xf32>
      %60 = vector.broadcast %cst_29 : f32 to vector<64x128xf32>
      %61 = arith.select %58, %59, %60 : vector<64x128xi1>, vector<64x128xf32>
      %62 = arith.truncf %61 : vector<64x128xf32> to vector<64x128xbf16>
      %c0_30 = arith.constant 0 : index
      %c0_31 = arith.constant 0 : index
      %63 = vector.load %arg4[%c0_30, %c0_31] : memref<64x128xbf16, #tpu.memory_space<vmem>>, vector<64x128xbf16>
      %cst_32 = arith.constant dense<0.000000e+00> : vector<128x128xf32>
      %64 = tpu.matmul %62, %63, %cst_32 {dimension_numbers = #tpu.dot_dimension_numbers<[0], [0], [1], [1], [0, 1, 1, 1], [], []>} : vector<64x128xbf16>, vector<64x128xbf16>, vector<128x128xf32> -> vector<128x128xf32>
      %65 = arith.truncf %64 : vector<128x128xf32> to vector<128x128xbf16>
      %c0_33 = arith.constant 0 : index
      %c0_34 = arith.constant 0 : index
      %66 = vector.load %arg12[%c0_33, %c0_34] : memref<128x128xbf16, #tpu.memory_space<vmem>>, vector<128x128xbf16>
      tpu.vector_store %arg12[%c0_33, %c0_34], %65 {strides = array<i32>} : memref<128x128xbf16, #tpu.memory_space<vmem>>, vector<128x128xbf16>,
      %cst_35 = arith.constant dense<0.000000e+00> : vector<128xf32>
      %67 = vector.multi_reduction <add>, %64, %cst_35 [0] : vector<128x128xf32> to vector<128xf32>
      %68 = vector.shape_cast %67 : vector<128xf32> to vector<1x128xf32>
      %69 = vector.shape_cast %68 : vector<1x128xf32> to vector<1x1x128xf32>
      %c0_36 = arith.constant 0 : index
      %c0_37 = arith.constant 0 : index
      %c0_38 = arith.constant 0 : index
      %70 = vector.load %arg11[%c0_36, %c0_37, %c0_38] : memref<1x1x128xf32, #tpu.memory_space<vmem>>, vector<1x1x128xf32>
      tpu.vector_store %arg11[%c0_36, %c0_37, %c0_38], %69 {strides = array<i32>} : memref<1x1x128xf32, #tpu.memory_space<vmem>>, vector<1x1x128xf32>,
      %c0_39 = arith.constant 0 : index
      %c0_40 = arith.constant 0 : index
      %71 = vector.load %arg12[%c0_39, %c0_40] : memref<128x128xbf16, #tpu.memory_space<vmem>>, vector<128x128xbf16>
      %c0_41 = arith.constant 0 : index
      %c0_42 = arith.constant 0 : index
      %72 = vector.load %arg7[%c0_41, %c0_42] : memref<128x128xbf16, #tpu.memory_space<vmem>>, vector<128x128xbf16>
      %cst_43 = arith.constant dense<0.000000e+00> : vector<128x128xf32>
      %73 = tpu.matmul %71, %72, %cst_43 {dimension_numbers = #tpu.dot_dimension_numbers<[1], [0], [0], [1], [0, 0, 1, 1], [], []>} : vector<128x128xbf16>, vector<128x128xbf16>, vector<128x128xf32> -> vector<128x128xf32>
      %c0_44 = arith.constant 0 : index
      %c0_45 = arith.constant 0 : index
      %74 = vector.load %arg13[%c0_44, %c0_45] : memref<128x128xf32, #tpu.memory_space<vmem>>, vector<128x128xf32>
      tpu.vector_store %arg13[%c0_44, %c0_45], %73 {strides = array<i32>} : memref<128x128xf32, #tpu.memory_space<vmem>>, vector<128x128xf32>,
      %cst_46 = arith.constant -1.000000e+30 : f32
      %75 = vector.broadcast %cst_46 : f32 to vector<1x128xf32>
      %c0_47 = arith.constant 0 : index
      %c0_48 = arith.constant 0 : index
      %76 = vector.load %arg14[%c0_47, %c0_48] : memref<1x128xf32, #tpu.memory_space<vmem>>, vector<1x128xf32>
      tpu.vector_store %arg14[%c0_47, %c0_48], %75 {strides = array<i32>} : memref<1x128xf32, #tpu.memory_space<vmem>>, vector<1x128xf32>,
      %cst_49 = arith.constant 0.000000e+00 : f32
      %77 = vector.broadcast %cst_49 : f32 to vector<1x128xf32>
      %c0_50 = arith.constant 0 : index
      %c0_51 = arith.constant 0 : index
      %78 = vector.load %arg15[%c0_50, %c0_51] : memref<1x128xf32, #tpu.memory_space<vmem>>, vector<1x128xf32>
      tpu.vector_store %arg15[%c0_50, %c0_51], %77 {strides = array<i32>} : memref<1x128xf32, #tpu.memory_space<vmem>>, vector<1x128xf32>,
      %cst_52 = arith.constant 0.000000e+00 : f32
      %79 = vector.broadcast %cst_52 : f32 to vector<128x128xf32>
      %c0_53 = arith.constant 0 : index
      %c0_54 = arith.constant 0 : index
      %80 = vector.load %arg16[%c0_53, %c0_54] : memref<128x128xf32, #tpu.memory_space<vmem>>, vector<128x128xf32>
      tpu.vector_store %arg16[%c0_53, %c0_54], %79 {strides = array<i32>} : memref<128x128xf32, #tpu.memory_space<vmem>>, vector<128x128xf32>,
    } else {
    }
    %c0 = arith.constant 0 : index
    %c0_1 = arith.constant 0 : index
    %c0_2 = arith.constant 0 : index
    %3 = vector.load %arg5[%c0, %c0_1, %c0_2] : memref<1x16x128xbf16, #tpu.memory_space<vmem>>, vector<1x16x128xbf16>
    %4 = vector.shape_cast %3 : vector<1x16x128xbf16> to vector<16x128xbf16>
    %c0_3 = arith.constant 0 : index
    %c0_4 = arith.constant 0 : index
    %5 = vector.load %arg12[%c0_3, %c0_4] : memref<128x128xbf16, #tpu.memory_space<vmem>>, vector<128x128xbf16>
    %cst = arith.constant dense<0.000000e+00> : vector<16x128xf32>
    %6 = tpu.matmul %4, %5, %cst {dimension_numbers = #tpu.dot_dimension_numbers<[1], [1], [0], [0], [0, 0, 1, 0], [], []>} : vector<16x128xbf16>, vector<128x128xbf16>, vector<16x128xf32> -> vector<16x128xf32>
    %cst_5 = arith.constant 0.0883883461 : f32
    %7 = vector.broadcast %cst_5 : f32 to vector<16x128xf32>
    %8 = arith.mulf %6, %7 : vector<16x128xf32>
    %c16_i32 = arith.constant 16 : i32
    %9 = arith.muli %arg1, %c16_i32 : i32
    %10 = tpu.iota {dimensions = array<i32: 0>} : vector<16x1xi32>
    %11 = vector.broadcast %9 : i32 to vector<16x1xi32>
    %12 = arith.addi %11, %10 : vector<16x1xi32>
    %13 = arith.index_cast %arg0 : i32 to index
    %14 = memref.load %arg2[%13] : memref<2xi32, #tpu.memory_space<smem>>
    %15 = vector.broadcast %14 : i32 to vector<16x1xi32>
    %16 = arith.cmpi slt, %12, %15 : vector<16x1xi32>
    %cst_6 = arith.constant -1.000000e+30 : f32
    %17 = vector.shape_cast %16 : vector<16x1xi1> to vector<16x1xi1>
    %18 = vector.broadcast %17 : vector<16x1xi1> to vector<16x128xi1>
    %19 = vector.broadcast %cst_6 : f32 to vector<16x128xf32>
    %20 = arith.select %18, %8, %19 : vector<16x128xi1>, vector<16x128xf32>
    %c0_7 = arith.constant 0 : index
    %c0_8 = arith.constant 0 : index
    %21 = vector.load %arg14[%c0_7, %c0_8] : memref<1x128xf32, #tpu.memory_space<vmem>>, vector<1x128xf32>
    %cst_9 = arith.constant dense<0xFF800000> : vector<128xf32>
    %22 = vector.multi_reduction <maximumf>, %20, %cst_9 [0] : vector<16x128xf32> to vector<128xf32>
    %23 = vector.shape_cast %22 : vector<128xf32> to vector<1x128xf32>
    %24 = arith.maximumf %21, %23 : vector<1x128xf32>
    %25 = arith.subf %21, %24 : vector<1x128xf32>
    %26 = math.exp %25 : vector<1x128xf32>
    %27 = vector.broadcast %24 : vector<1x128xf32> to vector<16x128xf32>
    %28 = arith.subf %20, %27 : vector<16x128xf32>
    %29 = math.exp %28 : vector<16x128xf32>
    %c0_10 = arith.constant 0 : index
    %c0_11 = arith.constant 0 : index
    %30 = vector.load %arg15[%c0_10, %c0_11] : memref<1x128xf32, #tpu.memory_space<vmem>>, vector<1x128xf32>
    %31 = arith.mulf %26, %30 : vector<1x128xf32>
    %cst_12 = arith.constant dense<0.000000e+00> : vector<128xf32>
    %32 = vector.multi_reduction <add>, %29, %cst_12 [0] : vector<16x128xf32> to vector<128xf32>
    %33 = vector.shape_cast %32 : vector<128xf32> to vector<1x128xf32>
    %34 = arith.addf %31, %33 : vector<1x128xf32>
    %c0_13 = arith.constant 0 : index
    %c0_14 = arith.constant 0 : index
    %35 = vector.load %arg15[%c0_13, %c0_14] : memref<1x128xf32, #tpu.memory_space<vmem>>, vector<1x128xf32>
    tpu.vector_store %arg15[%c0_13, %c0_14], %34 {strides = array<i32>} : memref<1x128xf32, #tpu.memory_space<vmem>>, vector<1x128xf32>,
    %c0_15 = arith.constant 0 : index
    %c0_16 = arith.constant 0 : index
    %36 = vector.load %arg16[%c0_15, %c0_16] : memref<128x128xf32, #tpu.memory_space<vmem>>, vector<128x128xf32>
    %37 = vector.broadcast %26 : vector<1x128xf32> to vector<128x128xf32>
    %38 = arith.mulf %37, %36 : vector<128x128xf32>
    %39 = arith.extf %4 : vector<16x128xbf16> to vector<16x128xf32>
    %cst_17 = arith.constant dense<0.000000e+00> : vector<128x128xf32>
    %40 = tpu.matmul %39, %29, %cst_17 {dimension_numbers = #tpu.dot_dimension_numbers<[0], [0], [1], [1], [0, 1, 1, 1], [], []>} : vector<16x128xf32>, vector<16x128xf32>, vector<128x128xf32> -> vector<128x128xf32>
    %41 = arith.addf %38, %40 : vector<128x128xf32>
    %c0_18 = arith.constant 0 : index
    %c0_19 = arith.constant 0 : index
    %42 = vector.load %arg16[%c0_18, %c0_19] : memref<128x128xf32, #tpu.memory_space<vmem>>, vector<128x128xf32>
    tpu.vector_store %arg16[%c0_18, %c0_19], %41 {strides = array<i32>} : memref<128x128xf32, #tpu.memory_space<vmem>>, vector<128x128xf32>,
    %c0_20 = arith.constant 0 : index
    %c0_21 = arith.constant 0 : index
    %43 = vector.load %arg14[%c0_20, %c0_21] : memref<1x128xf32, #tpu.memory_space<vmem>>, vector<1x128xf32>
    tpu.vector_store %arg14[%c0_20, %c0_21], %24 {strides = array<i32>} : memref<1x128xf32, #tpu.memory_space<vmem>>, vector<1x128xf32>,
    %c16_i32_22 = arith.constant 16 : i32
    %44 = arith.muli %arg1, %c16_i32_22 : i32
    %45 = tpu.assume_multiple %44, 16 : i32
    %46 = vector.shape_cast %29 : vector<16x128xf32> to vector<1x16x128xf32>
    %c0_23 = arith.constant 0 : index
    %47 = arith.index_cast %45 : i32 to index
    %c0_24 = arith.constant 0 : index
    %48 = vector.load %arg10[%c0_23, %47, %c0_24] : memref<1x32x128xf32, #tpu.memory_space<vmem>>, vector<1x16x128xf32>
    tpu.vector_store %arg10[%c0_23, %47, %c0_24], %46 {strides = array<i32>} : memref<1x32x128xf32, #tpu.memory_space<vmem>>, vector<1x16x128xf32>,
    %49 = arith.index_cast %arg1 : i32 to index
    %c0_25 = arith.constant 0 : index
    %50 = vector.load %arg17[%49, %c0_25] : memref<2x128xf32, #tpu.memory_space<vmem>>, vector<1x128xf32>
    tpu.vector_store %arg17[%49, %c0_25], %24 {strides = array<i32>} : memref<2x128xf32, #tpu.memory_space<vmem>>, vector<1x128xf32>,
    %c1_i32 = arith.constant 1 : i32
    %51 = arith.cmpi eq, %arg1, %c1_i32 : i32
    %52 = arith.extui %51 : i1 to i32
    %c0_i32_26 = arith.constant 0 : i32
    %53 = arith.cmpi ne, %52, %c0_i32_26 : i32
    scf.if %53 {
      %c0_27 = arith.constant 0 : index
      %c0_28 = arith.constant 0 : index
      %54 = vector.load %arg15[%c0_27, %c0_28] : memref<1x128xf32, #tpu.memory_space<vmem>>, vector<1x128xf32>
      %cst_29 = arith.constant 1.000000e-30 : f32
      %55 = vector.broadcast %cst_29 : f32 to vector<1x128xf32>
      %56 = arith.maximumf %54, %55 : vector<1x128xf32>
      %cst_30 = arith.constant 1.000000e+00 : f32
      %57 = vector.broadcast %cst_30 : f32 to vector<1x128xf32>
      %58 = arith.divf %57, %56 : vector<1x128xf32>
      %c0_31 = arith.constant 0 : index
      %c0_32 = arith.constant 0 : index
      %59 = vector.load %arg16[%c0_31, %c0_32] : memref<128x128xf32, #tpu.memory_space<vmem>>, vector<128x128xf32>
      %60 = vector.broadcast %58 : vector<1x128xf32> to vector<128x128xf32>
      %61 = arith.mulf %59, %60 : vector<128x128xf32>
      %c0_33 = arith.constant 0 : index
      %c0_34 = arith.constant 0 : index
      %62 = vector.load %arg6[%c0_33, %c0_34] : memref<128x128xbf16, #tpu.memory_space<vmem>>, vector<128x128xbf16>
      %63 = arith.extf %62 : vector<128x128xbf16> to vector<128x128xf32>
      %cst_35 = arith.constant dense<0.000000e+00> : vector<128x128xf32>
      %64 = tpu.matmul %61, %63, %cst_35 {dimension_numbers = #tpu.dot_dimension_numbers<[0], [0], [1], [1], [0, 1, 1, 1], [], []>} : vector<128x128xf32>, vector<128x128xf32>, vector<128x128xf32> -> vector<128x128xf32>
      %c0_36 = arith.constant 0 : index
      %c0_37 = arith.constant 0 : index
      %65 = vector.load %arg13[%c0_36, %c0_37] : memref<128x128xf32, #tpu.memory_space<vmem>>, vector<128x128xf32>
      %66 = arith.addf %64, %65 : vector<128x128xf32>
      %c0_38 = arith.constant 0 : index
      %c0_39 = arith.constant 0 : index
      %67 = vector.load %arg8[%c0_38, %c0_39] : memref<1x128xf32, #tpu.memory_space<vmem>>, vector<1x128xf32>
      %68 = vector.broadcast %67 : vector<1x128xf32> to vector<128x128xf32>
      %69 = arith.addf %66, %68 : vector<128x128xf32>
      %70 = math.tanh %69 : vector<128x128xf32>
      %71 = vector.shape_cast %70 : vector<128x128xf32> to vector<1x128x128xf32>
      %c0_40 = arith.constant 0 : index
      %c0_41 = arith.constant 0 : index
      %c0_42 = arith.constant 0 : index
      %72 = vector.load %arg9[%c0_40, %c0_41, %c0_42] : memref<1x128x128xf32, #tpu.memory_space<vmem>>, vector<1x128x128xf32>
      tpu.vector_store %arg9[%c0_40, %c0_41, %c0_42], %71 {strides = array<i32>} : memref<1x128x128xf32, #tpu.memory_space<vmem>>, vector<1x128x128xf32>,
      %c0_43 = arith.constant 0 : index
      %c0_44 = arith.constant 0 : index
      %73 = vector.load %arg14[%c0_43, %c0_44] : memref<1x128xf32, #tpu.memory_space<vmem>>, vector<1x128xf32>
      %c0_45 = arith.constant 0 : index
      %c0_46 = arith.constant 0 : index
      %74 = vector.load %arg17[%c0_45, %c0_46] : memref<2x128xf32, #tpu.memory_space<vmem>>, vector<1x128xf32>
      %75 = arith.subf %74, %73 : vector<1x128xf32>
      %76 = math.exp %75 : vector<1x128xf32>
      %77 = arith.mulf %76, %58 : vector<1x128xf32>
      %c0_47 = arith.constant 0 : index
      %c0_48 = arith.constant 0 : index
      %c0_49 = arith.constant 0 : index
      %78 = vector.load %arg10[%c0_47, %c0_48, %c0_49] : memref<1x32x128xf32, #tpu.memory_space<vmem>>, vector<1x16x128xf32>
      %79 = vector.shape_cast %77 : vector<1x128xf32> to vector<1x1x128xf32>
      %80 = vector.broadcast %79 : vector<1x1x128xf32> to vector<1x16x128xf32>
      %81 = arith.mulf %78, %80 : vector<1x16x128xf32>
      %c0_50 = arith.constant 0 : index
      %c0_51 = arith.constant 0 : index
      %c0_52 = arith.constant 0 : index
      %82 = vector.load %arg10[%c0_50, %c0_51, %c0_52] : memref<1x32x128xf32, #tpu.memory_space<vmem>>, vector<1x16x128xf32>
      tpu.vector_store %arg10[%c0_50, %c0_51, %c0_52], %81 {strides = array<i32>} : memref<1x32x128xf32, #tpu.memory_space<vmem>>, vector<1x16x128xf32>,
      %c1 = arith.constant 1 : index
      %c0_53 = arith.constant 0 : index
      %83 = vector.load %arg17[%c1, %c0_53] : memref<2x128xf32, #tpu.memory_space<vmem>>, vector<1x128xf32>
      %84 = arith.subf %83, %73 : vector<1x128xf32>
      %85 = math.exp %84 : vector<1x128xf32>
      %86 = arith.mulf %85, %58 : vector<1x128xf32>
      %c0_54 = arith.constant 0 : index
      %c16 = arith.constant 16 : index
      %c0_55 = arith.constant 0 : index
      %87 = vector.load %arg10[%c0_54, %c16, %c0_55] : memref<1x32x128xf32, #tpu.memory_space<vmem>>, vector<1x16x128xf32>
      %88 = vector.shape_cast %86 : vector<1x128xf32> to vector<1x1x128xf32>
      %89 = vector.broadcast %88 : vector<1x1x128xf32> to vector<1x16x128xf32>
      %90 = arith.mulf %87, %89 : vector<1x16x128xf32>
      %c0_56 = arith.constant 0 : index
      %c16_57 = arith.constant 16 : index
      %c0_58 = arith.constant 0 : index
      %91 = vector.load %arg10[%c0_56, %c16_57, %c0_58] : memref<1x32x128xf32, #tpu.memory_space<vmem>>, vector<1x16x128xf32>
      tpu.vector_store %arg10[%c0_56, %c16_57, %c0_58], %90 {strides = array<i32>} : memref<1x32x128xf32, #tpu.memory_space<vmem>>, vector<1x16x128xf32>,
    } else {
    }
    return
  }
  func.func @transform_0(%arg0: i32, %arg1: i32, %arg2: memref<2xi32, #tpu.memory_space<smem>>) -> (i32, i32) {
    %c0_i32 = arith.constant 0 : i32
    %c0_i32_0 = arith.constant 0 : i32
    %c0_i32_1 = arith.constant 0 : i32
    return %c0_i32, %c0_i32_0 : i32, i32
  }
  func.func @transform_1(%arg0: i32, %arg1: i32, %arg2: memref<2xi32, #tpu.memory_space<smem>>) -> (i32, i32) {
    %c0_i32 = arith.constant 0 : i32
    %c0_i32_0 = arith.constant 0 : i32
    %c0_i32_1 = arith.constant 0 : i32
    return %c0_i32, %c0_i32_0 : i32, i32
  }
  func.func @transform_2(%arg0: i32, %arg1: i32, %arg2: memref<2xi32, #tpu.memory_space<smem>>) -> (i32, i32, i32) {
    %c0_i32 = arith.constant 0 : i32
    %c0_i32_0 = arith.constant 0 : i32
    return %arg0, %arg1, %c0_i32 : i32, i32, i32
  }
  func.func @transform_3(%arg0: i32, %arg1: i32, %arg2: memref<2xi32, #tpu.memory_space<smem>>) -> (i32, i32) {
    %c0_i32 = arith.constant 0 : i32
    %c0_i32_0 = arith.constant 0 : i32
    %c0_i32_1 = arith.constant 0 : i32
    return %c0_i32, %c0_i32_0 : i32, i32
  }
  func.func @transform_4(%arg0: i32, %arg1: i32, %arg2: memref<2xi32, #tpu.memory_space<smem>>) -> (i32, i32) {
    %c0_i32 = arith.constant 0 : i32
    %c0_i32_0 = arith.constant 0 : i32
    %c0_i32_1 = arith.constant 0 : i32
    return %c0_i32, %c0_i32_0 : i32, i32
  }
  func.func @transform_5(%arg0: i32, %arg1: i32, %arg2: memref<2xi32, #tpu.memory_space<smem>>) -> (i32, i32) {
    %c0_i32 = arith.constant 0 : i32
    %c0_i32_0 = arith.constant 0 : i32
    %c0_i32_1 = arith.constant 0 : i32
    return %c0_i32, %c0_i32_0 : i32, i32
  }
  func.func @transform_6(%arg0: i32, %arg1: i32, %arg2: memref<2xi32, #tpu.memory_space<smem>>) -> (i32, i32, i32) {
    %c0_i32 = arith.constant 0 : i32
    %c0_i32_0 = arith.constant 0 : i32
    %c0_i32_1 = arith.constant 0 : i32
    return %arg0, %c0_i32, %c0_i32_0 : i32, i32, i32
  }
  func.func @transform_7(%arg0: i32, %arg1: i32, %arg2: memref<2xi32, #tpu.memory_space<smem>>) -> (i32, i32, i32) {
    %c0_i32 = arith.constant 0 : i32
    %c0_i32_0 = arith.constant 0 : i32
    %c0_i32_1 = arith.constant 0 : i32
    return %arg0, %c0_i32, %c0_i32_0 : i32, i32, i32
  }
  func.func @transform_8(%arg0: i32, %arg1: i32, %arg2: memref<2xi32, #tpu.memory_space<smem>>) -> (i32, i32, i32) {
    %c0_i32 = arith.constant 0 : i32
    %c0_i32_0 = arith.constant 0 : i32
    %c0_i32_1 = arith.constant 0 : i32
    return %arg0, %c0_i32, %c0_i32_0 : i32, i32, i32
  }
}

</mosaic_0001>

<bundles_post_ra>
// kernel: nmt_forward.2
= control target key start
LH: loop header
LB: loop body
LE: loop exit
PB: predicated region body
PF: predicated region fallthrough
CT: control target
= control target key end

     0   :  { %s1596_s0 = inlined_call_operand.vmem [shape: s32[2], index: 0, kind: input, shape index: {}]   ;;  %s1597_s1 = inlined_call_operand.vmem [shape: s32[2,2,16], index: 1, kind: input, shape index: {}]   ;;  %s1598_s2 = inlined_call_operand.hbm [shape: bf16[64,128], index: 2, kind: input, shape index: {}]   ;;  %s1599_s3 = inlined_call_operand.hbm [shape: bf16[128,128], index: 3, kind: input, shape index: {}]   ;;  %s1600_s4 = inlined_call_operand.hbm [shape: f32[1,128], index: 4, kind: input, shape index: {}]   ;;  %s1601_s5 = inlined_call_operand.vmem [shape: bf16[2,32,128], index: 5, kind: output, shape index: {0}]   ;;  %s1602_s6 = inlined_call_operand.hbm [shape: f32[2,1,128], index: 6, kind: output, shape index: {1}]   ;;  %s1603_s7 = inlined_call_operand.vmem [shape: f32[2,1,128], index: 7, kind: output, shape index: {2}]  }
   0x1   :  { %s13_s26 = sshll.u32 %s1596_s0, 4  ;;  %s14_s26 = int_to_ptr.vmem [resolvable:$true] %s13_s26 }
   0x2   :  { %s1052_s27 = scalar_lea.vmem %s14_s26, 16  ;;  %p1057_p1 = scmp.lt.s32.totalorder %s14_s26, %s14_s26 }
   0x3   :  { %p1053_p0 = scmp.ne.s32.totalorder %s14_s26, %s1052_s27  ;;  %p1058_p2 = scmp.lt.s32.totalorder %s1052_s27, %s1052_s27 }
   0x5   :  { %p1059_p3 = por %p1058_p2, %p1057_p1 }
   0x7   :  { %p1060_p4 = pnand %p1059_p3, %p1053_p0 }
   0x9   :  { %1063 = shalt.err (!%p1060_p4)  }
   0xa   :  { %s1254_s28 = smov [#allocation5]  }
   0xb   :  { %16 = dma.vmem_to_smem %s14_s26, 16, %s1254_s28, [#allocation4] }
   0xc   :  { %1208 = dma.done.wait [#allocation4], 16 }
   0xd   :  { %1209 = vsyncadd [#allocation4], 4294967280 }
   0xe   :  { %18 = sfence }
   0xf   :  { %19 = vsyncpa [#allocation7], 0 }
  0x10   :  { %20 = vsyncpa [#allocation10], 0 }
  0x11   :  { %21 = vsyncpa [#allocation8], 0 }
  0x12   :  { %23 = vsyncpa [#allocation8 + $0x1], 0  ;;  %s1307_s29 = smov 0   ;;  %s1309_s0 = smov 0  }
  0x13   :  { %s1311_s30 = smov 0   ;;  %s1313_s8 = smov 0  }
  0x14   :  { %s1315_s9 = smov 0   ;;  %s1317_s10 = smov 0  }
  0x15   :  { %s1319_s11 = smov 0   ;;  %s1321_s12 = smov 0  }
  0x16 LB: > { %1613 = sst [smem:[#allocation17_spill]] %s1232_s30  ;;  %s834_s13 = sadd.s32 4294967295, %s1252_s12   ;;  %s1252_s12 = sphi %s1321_s12, %s29_s12   ;;  %s1248_s11 = sphi %s1319_s11, %s1636_s11   ;;  %s1244_s10 = sphi %s1317_s10, %s1635_s10   ;;  %s1240_s9 = sphi %s1315_s9, %s1634_s9   ;;  %s1236_s8 = sphi %s1313_s8, %s1633_s8   ;;  %s1232_s30 = sphi %s1311_s30, %s1632_s30   ;;  %s1228_s0 = sphi %s1309_s0, %s1638_s0   ;;  %s1224_s29 = sphi %s1307_s29, %s1637_s29  }
  0x17   : > { %1614 = sst [smem:[#allocation18_spill]] %s1244_s10  ;;  %s835_s14 = sadd.s32 4294967294, %s1252_s12  }
  0x18   : > { %1615 = sst [smem:[#allocation19_spill]] %s1248_s11  ;;  %s38_s15 = sadd.s32 1, %s1244_s10 }
  0x19   : > { %s41_s16 = sadd.s32 1, %s1248_s11  ;;  %p39_p5 = scmp.ge.s32.totalorder %s38_s15, 2 }
  0x1a   : > { %s165_s17 = sadd.s32 1, %s1232_s30  ;;  %p175_p6 = scmp.ne.s32.totalorder %s1232_s30, %s1228_s0 }
  0x1b   : > { %p176_p7 = scmp.eq.s32.totalorder %s834_s13, 3  ;;  %s1640_s15 = smov (%p39_p5, %s38_s15), 0 }
  0x1c   : > { %1616 = sst [smem:[#allocation20_spill]] %s1640_s15  ;;  %s1642_s16 = smov (!%p39_p5, %s41_s16), %s1248_s11 }
  0x1d   : > { %p1357_p8 = por %p176_p7, %p175_p6  ;;  %p181_p9 = scmp.ne.s32.totalorder %s1228_s0, %s1224_s29 }
  0x1e   : > { %p43_p10 = scmp.ge.s32.totalorder %s1642_s16, 2  ;;  %p182_p11 = scmp.eq.s32.totalorder %s835_s14, 3 }
  0x1f   : > { %s1617_s18 = scalar_select %p1357_p8, 1, 0 }
  0x20   : > { %p836_p12 = scmp.ge.s32.totalorder %s1252_s12, 1  ;;  %p215_p13 = scmp.lt.s32.totalorder %s1252_s12, 5 }
  0x21   : > { %s1644_s16 = smov (%p43_p10, %s1642_s16), 0  ;;  %p1367_p0 = por %p182_p11, %p181_p9 }
  0x22   : > { %1618 = sst [smem:[#allocation21_spill]] %s1644_s16  ;;  %p1371_p1 = pnand %p836_p12, %p215_p13 }
  0x23   : > { %s1619_s19 = scalar_select %p1367_p0, 1, 0 }
  0x24   : > { %s1621_s20 = scalar_select %p1371_p1, 1, 0 }
  0x25   : > { %1620 = sst [smem:[#allocation22_spill]] %s1619_s19  ;;  %s162_s21 = ssub.s32 %s1248_s11, %s1644_s16 }
  0x26   : > { %p163_p2 = scmp.eq.s32.totalorder %s162_s21, 0  ;;  %p939_p3 = pneg %p1371_p1 }
  0x27   : > { %p1379_p4 = scmp.eq.s32.totalorder %s834_s13, 0  ;;  %s1255_s25 = smov [#allocation9]  }
  0x28   : > { %s1384_s23 = scalar_select %p163_p2, %s1232_s30, %s165_s17  }
  0x29   : > { %s1622_s22 = scalar_select %p1379_p4, 1, 0 }
  0x2a   : > { %1623 = sst [smem:[#allocation23_spill]] %s1384_s23  ;;  %p1388_p5 = pnand %p1379_p4, %p939_p3 }
  0x2b   : > { %s240_s26 = sshll.u32 %s1255_s25, 4  ;;  %s1064_s14 = scalar_lea.hbm %s1599_s3, 1024  ;;  %s241_s26 = int_to_ptr.vmem [resolvable:$true] %s240_s26 }
  0x2c   : > { %p1065_p6 = scmp.ne.s32.totalorder %s1599_s3, %s1064_s14  ;;  %p1400_p7 = pneg %p1388_p5 }
  0x2d   : > { %p1071_p11 = scmp.lt.u32.totalorder %s1064_s14, %s1599_s3 }
  0x2e   : > { %p1067_p9 = pnand %p1400_p7, %p1065_p6 }
  0x30   : > { %p1068_p10 = pneg %p1067_p9 }
  0x32   : > { %p1073_p12 = pnand %p1071_p11, %p1068_p10 }
  0x34   : > { %1076 = shalt.err (!%p1073_p12)
}
  0x35   : > { %s1077_s27 = scalar_lea.vmem %s241_s26, 1024  ;;  %p1085_p0 = scmp.lt.s32.totalorder %s241_s26, %s241_s26 }
  0x36   : > { %p1078_p13 = scmp.ne.s32.totalorder %s241_s26, %s1077_s27  ;;  %p1086_p8 = scmp.lt.s32.totalorder %s1077_s27, %s1077_s27 }
  0x38   : > { %p1080_p2 = pnand %p1078_p13, %p1400_p7  ;;  %p1087_p4 = por %p1086_p8, %p1085_p0 }
  0x3a   : > { %p1081_p3 = pneg %p1080_p2 }
  0x3c   : > { %p1088_p1 = pnand %p1087_p4, %p1081_p3 }
  0x3e   : > { %1091 = shalt.err (!%p1088_p1)
}
  0x3f   : > { %s1256_s28 = smov 64   ;;  %s1257_s13 = smov 4  }
  0x40   : > { %945 = dma.hbm_to_vmem [thread:$0]  (!%p1388_p5), %s1599_s3, 1024, %s241_s26, [#allocation10], %s1256_s28, %s1256_s28, %s1257_s13  }
  0x41   : > { %s1258_s21 = smov [#allocation6]   ;;  %s1259_s15 = smov [#allocation11]  }
  0x42   : > { %s227_s25 = sshll.u32 %s1258_s21, 4  ;;  %s254_s11 = sshll.u32 %s1259_s15, 4  ;;  %s228_s25 = int_to_ptr.vmem [resolvable:$true] %s227_s25  ;;  %s1416_s11 = int_to_ptr.vmem [resolvable:$true] %s254_s11 }
  0x43   : > { %s1092_s23 = scalar_lea.hbm %s1598_s2, 512 }
  0x44   : > { %p1093_p8 = scmp.ne.s32.totalorder %s1598_s2, %s1092_s23  ;;  %p1099_p4 = scmp.lt.u32.totalorder %s1092_s23, %s1598_s2 }
  0x46   : > { %p1095_p0 = pnand %p1093_p8, %p1400_p7 }
  0x48   : > { %p1096_p1 = pneg %p1095_p0 }
  0x4a   : > { %p1101_p6 = pnand %p1099_p4, %p1096_p1 }
  0x4c   : > { %1104 = shalt.err (!%p1101_p6)
}
  0x4d   : > { %s1105_s15 = scalar_lea.vmem %s228_s25, 512  ;;  %p1113_p12 = scmp.lt.s32.totalorder %s228_s25, %s228_s25 }
  0x4e   : > { %p1106_p9 = scmp.ne.s32.totalorder %s228_s25, %s1105_s15  ;;  %p1114_p13 = scmp.lt.s32.totalorder %s1105_s15, %s1105_s15 }
  0x50   : > { %p1108_p10 = pnand %p1106_p9, %p1400_p7  ;;  %p1115_p2 = por %p1114_p13, %p1113_p12 }
  0x52   : > { %p1109_p11 = pneg %p1108_p10 }
  0x54   : > { %p1116_p3 = pnand %p1115_p2, %p1109_p11 }
  0x56   : > { %1119 = shalt.err (!%p1116_p3)
}
  0x57   : > { %942 = dma.hbm_to_vmem [thread:$0]  (!%p1388_p5), %s1598_s2, 512, %s228_s25, [#allocation7], %s1256_s28, %s1256_s28, %s1257_s13  }
  0x58   : > { %s1120_s14 = scalar_lea.hbm %s1600_s4, 16 }
  0x59   : > { %p1121_p8 = scmp.ne.s32.totalorder %s1600_s4, %s1120_s14  ;;  %p1127_p4 = scmp.lt.u32.totalorder %s1120_s14, %s1600_s4 }
  0x5b   : > { %p1123_p0 = pnand %p1121_p8, %p1400_p7 }
  0x5d   : > { %p1124_p1 = pneg %p1123_p0 }
  0x5f   : > { %p1129_p6 = pnand %p1127_p4, %p1124_p1 }
  0x61   : > { %1132 = shalt.err (!%p1129_p6)
}
  0x62   : > { %s1133_s28 = scalar_lea.vmem %s1416_s11, 16  ;;  %s1140_s13 = scalar_lea.vmem %s1416_s11, 32 }
  0x63   : > { %p1134_p9 = scmp.ne.s32.totalorder %s1416_s11, %s1133_s28  ;;  %p1141_p12 = scmp.lt.s32.totalorder %s1416_s11, %s1416_s11 }
  0x64   : > { %p1142_p13 = scmp.lt.s32.totalorder %s1140_s13, %s1133_s28 }
  0x65   : > { %p1136_p10 = pnand %p1134_p9, %p1400_p7 }
  0x66   : > { %p1143_p2 = por %p1142_p13, %p1141_p12 }
  0x67   : > { %p1137_p11 = pneg %p1136_p10 }
  0x69   : > { %p1144_p3 = pnand %p1143_p2, %p1137_p11 }
  0x6b   : > { %1147 = shalt.err (!%p1144_p3)
}
  0x6c   : > { %948 = dma.hbm_to_vmem [thread:$0]  (!%p1388_p5), %s1600_s4, 16, %s1416_s11, [#allocation10]  }
  0x6d   : > { %p1626_p8 = scmp.ne.s32.totalorder %s1621_s20, 0 }
  0x6e   : > { %p1627_p7 = scmp.ne.s32.totalorder (!%p1626_p8), %s1622_s22, 0 }
  0x6f   : > { %274 = sbr.rel (%p1626_p8) target bundleno = 751 (0x2ef), region = 36 }
  0x76   : > { %1211 = dma.done.wait (%p1627_p7), [#allocation7], 512  }
  0x77   : > { %1213 = vsyncadd (%p1627_p7), [#allocation7], 4294966784 }
  0x78   : > { %1215 = dma.done.wait (%p1627_p7), [#allocation10], 1040  }
  0x79   : > { %1217 = vsyncadd (%p1627_p7), [#allocation10], 4294966256  ;;  %p322_p0 = scmp.lt.s32.totalorder %s1236_s8, 1  ;;  %v342_v0 = vlaneseq  ;;  %s315_s11 = sand.u32 1, %s1228_s0   ;;  %v1260_v1 = vmov 0.0   ;;  %vm1261_vm0 = vmmov 0  }
  0x7a   : > { %893 = vmatprep.subr.bf16.mxu0 %v1260_v1  ;;  %905 = vmatprep.subr.bf16.mxu1 %v1260_v1  ;;  %v1034_v11 = vld [vmem:[#allocation6] sm:$0xff]   ;;  %v1035_v16 = vld [vmem:[#allocation6 + $0x8] sm:$0xff]   ;;  %v1036_v23 = vld [vmem:[#allocation6 + $0x10] sm:$0xff]   ;;  %vm423_vm9 = vcmask 523264   ;;  %p327_p5 = scmp.lt.s32.totalorder %s1240_s9, 1  ;;  %s846_s27 = sshll.u32 %s1236_s8, 1 }
  0x7b   : > { %s323_s20 = scalar_select %p322_p0, %s1236_s8, 1  ;;  %v1475_v2 = vshrl.u32 %v342_v0, 7  ;;  %901 = vmatprep.mubr.msk.bf16.mxu0 %vm1261_vm0, %v1260_v1  ;;  %921 = vmatprep.mubr.msk.bf16.mxu1 %vm1261_vm0, %v1260_v1  ;;  %v1038_v18 = vld [vmem:[#allocation9] sm:$0xff]   ;;  %v1039_v22 = vld [vmem:[#allocation9 + $0x8] sm:$0xff]   ;;  %v1040_v27 = vld [vmem:[#allocation9 + $0x10] sm:$0xff]  }
  0x7c   : > { %894 = vmatpush3.bf16.msra.mxu0 %v1034_v11  ;;  %906 = vmatpush3.bf16.msra.mxu1 %v1038_v18  ;;  %v1037_v28 = vld [vmem:[#allocation6 + $0x18] sm:$0xff]   ;;  %v1042_v31 = vld [vmem:[#allocation9 + $0x20] sm:$0xff]   ;;  %v1043_v32 = vld [vmem:[#allocation9 + $0x28] sm:$0xff]   ;;  %s1514_s19 = scalar_select %p327_p5, %s1240_s9, 1 }
  0x7d   : > { %s845_s22 = sshll.u32 %s323_s20, 1  ;;  %v1480_v3 = vadd.s32 8, %v1475_v2  ;;  %v345_v4 = vadd.s32 16, %v1475_v2  ;;  %v346_v5 = vadd.s32 24, %v1475_v2  ;;  %v347_v6 = vadd.s32 32, %v1475_v2  ;;  %895 = vmatprep.subr.bf16.mxu0 %v1260_v1  ;;  %907 = vmatprep.subr.bf16.mxu1 %v1260_v1  ;;  %v1041_v30 = vld [vmem:[#allocation9 + $0x18] sm:$0xff]  }
  0x7e   : > { %s325_s30 = scalar_lea.vmem %s1597_s1, %s845_s22  ;;  %v348_v7 = vadd.s32 40, %v1475_v2  ;;  %v349_v8 = vadd.s32 48, %v1475_v2  ;;  %v350_v9 = vadd.s32 56, %v1475_v2  ;;  %v1044_v33 = vld [vmem:[#allocation9 + $0x30] sm:$0xff]   ;;  %v1045_v35 = vld [vmem:[#allocation9 + $0x38] sm:$0xff]   ;;  %s338_s21 = scalar_lea.vmem %s1603_s7, %s1514_s19 }
  0x7f   : > { %s340_s10 = scalar_lea.vmem %s325_s30, %s1240_s9  ;;  %v855_v41 = vld [vmem:[#allocation11] ss:$0 sm:$0xff]  ;;  %p329_p1 = scmp.lt.s32.totalorder %s846_s27, 3 }
  0x80   : > { %v849_v10 = vld [vmem:[%s340_s10] ss:$0 sm:$0xff]  ;;  %896 = vmatpush3.bf16.msra.mxu0 %v1035_v16  ;;  %908 = vmatpush3.bf16.msra.mxu1 %v1039_v22  ;;  %s847_s16 = sshll.u32 %s1514_s19, 2  ;;  %s1527_s20 = scalar_lea.vmem [#allocation12], %s315_s11 }
  0x81   : > { %vm355_vm1 = vcmp.eq.s32.totalorder %v1475_v2, %v849_v10  ;;  %vm356_vm2 = vcmp.eq.s32.totalorder %v1480_v3, %v849_v10  ;;  %vm357_vm3 = vcmp.eq.s32.totalorder %v345_v4, %v849_v10  ;;  %vm358_vm4 = vcmp.eq.s32.totalorder %v346_v5, %v849_v10  ;;  %897 = vmatprep.subr.bf16.mxu0 %v1260_v1  ;;  %s1646_s27 = smov (!%p329_p1, %s846_s27), 3  ;;  %p866_p4 = scmp.ne.s32.totalorder %s1236_s8, 0 }
  0x82   : > { %v363_v12 = vsel %vm355_vm1, 1.0, %v1260_v1  ;;  %v364_v13 = vsel %vm356_vm2, 1.0, %v1260_v1  ;;  %v365_v14 = vsel %vm357_vm3, 1.0, %v1260_v1  ;;  %v366_v15 = vsel %vm358_vm4, 1.0, %v1260_v1  ;;  %909 = vmatprep.subr.bf16.mxu1 %v1260_v1  ;;  %s332_s26 = sadd.s32 %s847_s16, %s1646_s27 }
  0x83   : > { %v371_v17 = vpack.c.bf16 %v364_v13, %v363_v12  ;;  %vm359_vm5 = vcmp.eq.s32.totalorder %v347_v6, %v849_v10  ;;  %vm360_vm6 = vcmp.eq.s32.totalorder %v348_v7, %v849_v10  ;;  %v372_v19 = vpack.c.bf16 %v366_v15, %v365_v14  ;;  %s848_s28 = sshll.u32 %s332_s26, 2 }
  0x84   : > { %v367_v20 = vsel %vm359_vm5, 1.0, %v1260_v1  ;;  %v368_v21 = vsel %vm360_vm6, 1.0, %v1260_v1  ;;  %vm361_vm7 = vcmp.eq.s32.totalorder %v349_v8, %v849_v10  ;;  %vm362_vm8 = vcmp.eq.s32.totalorder %v350_v9, %v849_v10  ;;  %898 = vmatpush3.bf16.msra.mxu0 %v1036_v23  ;;  %910 = vmatpush3.bf16.msra.mxu1 %v1040_v27  ;;  %s334_s15 = scalar_lea.vmem %s1601_s5, %s848_s28 }
  0x85   : > { %383 = vxpose.xlu0.c.b16.start [1/4] (short) (narrow) %v371_v17, 16  ;;  %v373_v24 = vpack.c.bf16 %v368_v21, %v367_v20  ;;  %v369_v25 = vsel %vm361_vm7, 1.0, %v1260_v1  ;;  %v370_v26 = vsel %vm362_vm8, 1.0, %v1260_v1  ;;  %899 = vmatprep.subr.bf16.mxu0 %v1260_v1  ;;  %v1262_v51 = vmov (!%p866_p4), 0.0  }
  0x86   : > { %v374_v29 = vpack.c.bf16 %v370_v26, %v369_v25  ;;  %911 = vmatprep.subr.bf16.mxu1 %v1260_v1  ;;  %597 = vst [vmem:[#allocation2] sm:$0x1] (!%p866_p4), %v1262_v51  ;;  %598 = vst [vmem:[#allocation3] sm:$0x1] (!%p866_p4), %v1262_v51 }
  0x88   : > { %900 = vmatpush3.bf16.msra.mxu0 %v1037_v28  ;;  %912 = vmatpush3.bf16.msra.mxu1 %v1041_v30 }
  0x89   : > { %384 = vxpose.xlu0.c.b16.cont [2/4] (short) (narrow) %v372_v19, 16  ;;  %913 = vmatprep.subr.bf16.mxu1 %v1260_v1 }
  0x8c   : > { %914 = vmatpush3.bf16.msra.mxu1 %v1042_v31 }
  0x8d   : > { %385 = vxpose.xlu0.c.b16.cont [3/4] (short) (narrow) %v373_v24, 16  ;;  %915 = vmatprep.subr.bf16.mxu1 %v1260_v1 }
  0x90   : > { %916 = vmatpush3.bf16.msra.mxu1 %v1043_v32 }
  0x91   : > { %386 = vxpose.xlu0.c.b16.end [4/4] (short) (narrow) %v374_v29, 16  ;;  %917 = vmatprep.subr.bf16.mxu1 %v1260_v1 }
  0x94   : > { %918 = vmatpush3.bf16.msra.mxu1 %v1044_v33 }
  0x95   : > { %919 = vmatprep.subr.bf16.mxu1 %v1260_v1 }
  0x98   : > { %920 = vmatpush3.bf16.msra.mxu1 %v1045_v35 }
  0xeb   : > { %v391_v34 = vpop.trf.xlu0 }
  0xec   : > { %902 = vmatmul.mubr.msk.bf16.vlgmr.msra.gmra.mrb[0].mxu0 %vm423_vm9, %v391_v34 }
 0x1bf   : > { %v461_v36 = vpop.f32.mrb[0].mxu0 }
 0x1c0   : > { %v903_v37 = vpop.f32.mrb[1].mxu0 }
 0x1c1   : > { %v464_v38 = vpop.f32.mrb[2].mxu0 }
 0x1c2   : > { %v468_v39 = vpack.c.bf16 %v464_v38, %v461_v36  ;;  %v904_v40 = vpop.f32.mrb[3].mxu0 }
 0x1c4   : > { %922 = vmatmul.mubr.bf16.vlgmr.msra.gmra.mrb[0].mxu1 %v468_v39 }
 0x297   : > { %v574_v42 = vpop.f32.mrb[0].mxu1 }
 0x298   : > { %v575_v43 = vadd.f32 %v855_v41, %v574_v42  ;;  %v923_v44 = vpop.f32.mrb[1].mxu1 }
 0x299   : > { %v577_v45 = vpop.f32.mrb[2].mxu1 }
 0x29a   : > { %v578_v46 = vadd.f32 %v855_v41, %v577_v45  ;;  %v924_v47 = vpop.f32.mrb[3].mxu1  ;;  %1046 = vtanh.f32 %v575_v43 }
 0x29c   : > { %1048 = vtanh.f32 %v578_v46 }
 0x2a3   : > { %596 = sbr.rel (%p866_p4) target bundleno = 682 (0x2aa), region = 52 }
 0x2a4   : > { %v1047_v48 = vpop.eup %1046 }
 0x2a6   : > { %v1049_v49 = vpop.eup %1048 }
 0x2a7   : > { %v877_v50 = vpack.c.bf16 %v1049_v49, %v1047_v48 }
 0x2a9   : > { %878 = vst [vmem:[%s334_s15] sm:$0xff] %v877_v50  }
 0x2aa PF: > { %s867_s22 = sshll.u32 %s1236_s8, 4  ;;  %s603_s24 = sld [smem:[#allocation5 + %s1240_s9]]  ;;  %v624_v52 = vadd.f32 %v1049_v49, %v1047_v48  ;;  %v623_v4 = vld [vmem:[#allocation3] sm:$0x1] }
 0x2ab   : > { %v600_v53 = vstv %s867_s22  ;;  %p868_p6 = scmp.ne.s32.totalorder %s1236_s8, 1 }
 0x2ac   : > { %v625_v54 = vrot.slane %v624_v52, 4  ;;  %v601_v55 = vadd.s32 %v600_v53, %v1475_v2  ;;  %v602_v56 = vadd.s32 %v600_v53, %v1480_v3  ;;  %v613_v3 = vld [vmem:[#allocation2] sm:$0x1]  ;;  %s637_s17 = sld [smem:[#allocation5 + %s1240_s9]] (!%p868_p6) }
 0x2ae   : > { %v626_v57 = vadd.f32 %v625_v54, %v624_v52 }
 0x2b0   : > { %v604_v58 = vstv %s603_s24  ;;  %v627_v59 = vrot.slane %v626_v57, 2 }
 0x2b1   : > { %vm605_vm10 = vcmp.lt.s32.totalorder %v601_v55, %v604_v58  ;;  %vm606_vm11 = vcmp.lt.s32.totalorder %v602_v56, %v604_v58 }
 0x2b2   : > { %v611_v60 = vsel %vm605_vm10, %v1047_v48, 0.0  ;;  %v612_v61 = vsel %vm606_vm11, %v1049_v49, 0.0  ;;  %v628_v62 = vadd.f32 %v627_v59, %v626_v57  ;;  %p638_p9 = scmp.gt.s32.totalorder (!%p868_p6), %s637_s17, 1 }
 0x2b3   : > { %v614_v63 = vadd.f32 %v612_v61, %v611_v60 }
 0x2b4   : > { %v629_v0 = vrot.slane %v628_v62, 1 }
 0x2b5   : > { %v615_v1 = vrot.slane %v614_v63, 4 }
 0x2b6   : > { %v630_v5 = vadd.f32 %v629_v0, %v628_v62 }
 0x2b7   : > { %v616_v6 = vadd.f32 %v615_v1, %v614_v63 }
 0x2b8   : > { %v631_v7 = vadd.f32 %v630_v5, %v623_v4 }
 0x2b9   : > { %v617_v8 = vrot.slane %v616_v6, 2 }
 0x2ba   : > { %632 = vst [vmem:[#allocation3] sm:$0x1] %v631_v7 }
 0x2bb   : > { %v618_v2 = vadd.f32 %v617_v8, %v616_v6 }
 0x2bd   : > { %v619_v9 = vrot.slane %v618_v2, 1  ;;  %636 = sbr.rel (%p868_p6) target bundleno = 726 (0x2d6), region = 56 }
 0x2bf   : > { %v620_v10 = vadd.f32 %v619_v9, %v618_v2 }
 0x2c1   : > { %v621_v11 = vadd.f32 %v620_v10, %v613_v3  ;;  %v646_v12 = vld [vmem:[#allocation3] sm:$0x1] (!%p868_p6) }
 0x2c2   : > { %647 = vst [vmem:[%s338_s21] sm:$0x1] (!%p868_p6), %v646_v12 }
 0x2c3   : > { %622 = vst [vmem:[#allocation2] sm:$0x1] %v621_v11 }
 0x2c4   : > { %s1648_s17 = smov (!%p638_p9, %s637_s17), 1 }
 0x2c5   : > { %s640_s23 = scvt.s32.f32 %s1648_s17 }
 0x2c7   : > { %v642_v13 = vstv %s640_s23 }
 0x2c8   : > { %1050 = vrcp.f32 %v642_v13 }
 0x2ca   : > { %v641_v14 = vld [vmem:[#allocation2] sm:$0x1] }
 0x2d2   : > { %v1051_v15 = vpop.eup %1050 }
 0x2d3   : > { %v644_v16 = vmul.f32 %v1051_v15, %v641_v14 }
 0x2d5   : > { %645 = vst [vmem:[%s1527_s20] sm:$0x1] %v644_v16 }
 0x2d6 PF: > { %s869_s8 = sshll.u32 %s1240_s9, 4  ;;  %s677_s21 = sshll.u32 %s1527_s20, 4  ;;  %s678_s21 = int_to_ptr.vmem [resolvable:$true] %s677_s21 }
 0x2d7   : > { %s1546_s19 = scalar_lea.hbm %s1602_s6, %s869_s8  ;;  %s658_s16 = scalar_lea.sflag [#allocation8], %s315_s11 }
 0x2d8   : > { %s1148_s26 = scalar_lea.vmem %s678_s21, 16  ;;  %p1628_p11 = scmp.ne.s32.totalorder %s1617_s18, 0 }
 0x2d9   : > { %p1149_p10 = scmp.ne.s32.totalorder %s678_s21, %s1148_s26  ;;  %s1263_s28 = smov [#allocation12]  }
 0x2da   : > { %s1152_s13 = sshll.u32 %s1263_s28, 4  ;;  %s1153_s13 = int_to_ptr.vmem [resolvable:$false] %s1152_s13 }
 0x2db   : > { %p1150_p12 = pnand %p1149_p10, %p1628_p11  ;;  %s1154_s25 = scalar_lea.vmem %s1153_s13, 32 }
 0x2dc   : > { %p1155_p2 = scmp.lt.s32.totalorder %s678_s21, %s1153_s13  ;;  %p1156_p3 = scmp.lt.s32.totalorder %s1154_s25, %s1148_s26 }
 0x2dd   : > { %p1151_p13 = pneg %p1150_p12 }
 0x2de   : > { %p1157_p8 = por %p1156_p3, %p1155_p2 }
 0x2e0   : > { %p1158_p7 = pnand %p1157_p8, %p1151_p13 }
 0x2e2   : > { %1161 = shalt.err (!%p1158_p7)
}
 0x2e3   : > { %s1162_s9 = scalar_lea.hbm %s1546_s19, 16  ;;  %s1166_s20 = scalar_lea.hbm %s1602_s6, 32 }
 0x2e4   : > { %p1163_p0 = scmp.ne.s32.totalorder %s1546_s19, %s1162_s9  ;;  %p1167_p4 = scmp.lt.u32.totalorder %s1546_s19, %s1602_s6 }
 0x2e5   : > { %p1168_p6 = scmp.lt.u32.totalorder %s1166_s20, %s1162_s9  ;;  %p1170_p10 = scmp.lt.u32.totalorder %s1162_s9, %s1546_s19 }
 0x2e6   : > { %p1164_p5 = pnand %p1163_p0, %p1628_p11 }
 0x2e7   : > { %p1169_p9 = por %p1168_p6, %p1167_p4 }
 0x2e8   : > { %p1165_p1 = pneg %p1164_p5 }
 0x2e9   : > { %p1171_p12 = por %p1170_p10, %p1169_p9 }
 0x2eb   : > { %p1172_p13 = pnand %p1171_p12, %p1165_p1 }
 0x2ed   : > { %1175 = shalt.err (!%p1172_p13)
}
 0x2ee   : > { %937 = dma.vmem_to_hbm [thread:$0]  (%p1628_p11), %s678_s21, 16, %s1546_s19, %s658_s16  }
 0x2ef PF: > { %s1629_s17 = sld [smem:[#allocation22_spill]]  ;;  %p959_p2 = scmp.ge.s32.totalorder %s1252_s12, 2 }
 0x2f0   : > { %s704_s30 = sand.u32 1, %s1224_s29  }
 0x2f1   : > { %s705_s10 = scalar_lea.sflag [#allocation8], %s704_s30 }
 0x2f5   : > { %p1630_p3 = scmp.ne.s32.totalorder %s1629_s17, 0 }
 0x2f7   : > { %p950_p8 = pnand %p959_p2, %p1630_p3 }
 0x2f9   : > { %1219 = dma.done.wait (!%p950_p8), %s705_s10, 16  }
 0x2fa   : > { %1221 = vsyncadd (!%p950_p8), %s705_s10, 4294967280  ;;  %s29_s12 = sadd.s32 1, %s1252_s12   ;;  %s1631_s23 = sld [smem:[#allocation17_spill]] }
 0x2fb   : > { %p26_p7 = scmp.ge.s32.totalorder %s29_s12, 6   ;;  %s1632_s30 = sld [smem:[#allocation23_spill]] }
 0x2fc   : > { %s1633_s8 = sld [smem:[#allocation18_spill]]  ;;  %s1634_s9 = sld [smem:[#allocation19_spill]] }
 0x2fd   : > { %s1635_s10 = sld [smem:[#allocation20_spill]]  ;;  %s1636_s11 = sld [smem:[#allocation21_spill]] }
 0x2fe   : > { %s1637_s29 = smov %s1228_s0  ;;  %28 = sbr.rel (!%p26_p7) target bundleno = 22 (0x16), region = 117 }
 0x300   : > { %s1638_s0 = smov %s1631_s23 }
 0x305   :  { %715 = vsyncpa [#allocation7], 1 }
 0x306   :  { %717 = vsyncpa [#allocation7 + $0x1], 1 }
 0x307   :  { %718 = vsyncpa [#allocation10], 1 }
 0x308   :  { %719 = vsyncpa [#allocation8], 1 }
 0x309   :  { %721 = vsyncpa [#allocation8 + $0x1], 1 }

// kernel: nmt_forward.3
= control target key start
LH: loop header
LB: loop body
LE: loop exit
PB: predicated region body
PF: predicated region fallthrough
CT: control target
= control target key end

     0   :  { %s2618_s0 = inlined_call_operand.vmem [shape: s32[2], index: 0, kind: input, shape index: {}]   ;;  %s2619_s1 = inlined_call_operand.vmem [shape: s32[2,128], index: 1, kind: input, shape index: {}]   ;;  %s2620_s2 = inlined_call_operand.vmem [shape: bf16[64,128], index: 2, kind: input, shape index: {}]   ;;  %s2621_s3 = inlined_call_operand.vmem [shape: bf16[2,32,128], index: 3, kind: input, shape index: {}]   ;;  %s2622_s4 = inlined_call_operand.vmem [shape: bf16[128,128], index: 4, kind: input, shape index: {}]   ;;  %s2623_s5 = inlined_call_operand.vmem [shape: bf16[128,128], index: 5, kind: input, shape index: {}]   ;;  %s2624_s6 = inlined_call_operand.vmem [shape: f32[1,128], index: 6, kind: input, shape index: {}]   ;;  %s2625_s7 = inlined_call_operand.vmem [shape: f32[2,128,128], index: 7, kind: output, shape index: {0}]   ;;  %s2626_s8 = inlined_call_operand.vmem [shape: f32[2,32,128], index: 8, kind: output, shape index: {1}]   ;;  %s2627_s9 = inlined_call_operand.vmem [shape: f32[2,1,128], index: 9, kind: output, shape index: {2}]  }
   0x1   :  { %s15_s11 = sshll.u32 %s2618_s0, 4  ;;  %s16_s11 = int_to_ptr.vmem [resolvable:$true] %s15_s11 }
   0x2   :  { %s2235_s12 = scalar_lea.vmem %s16_s11, 16  ;;  %p2240_p1 = scmp.lt.s32.totalorder %s16_s11, %s16_s11 }
   0x3   :  { %p2236_p0 = scmp.ne.s32.totalorder %s16_s11, %s2235_s12  ;;  %p2241_p2 = scmp.lt.s32.totalorder %s2235_s12, %s2235_s12 }
   0x5   :  { %p2242_p3 = por %p2241_p2, %p2240_p1 }
   0x7   :  { %p2243_p4 = pnand %p2242_p3, %p2236_p0 }
   0x9   :  { %2246 = shalt.err (!%p2243_p4)  }
   0xa   :  { %s2289_s13 = smov [#allocation9]  }
   0xb   :  { %18 = dma.vmem_to_smem %s16_s11, 16, %s2289_s13, [#allocation8] }
   0xc   :  { %2267 = dma.done.wait [#allocation8], 16 }
   0xd   :  { %2268 = vsyncadd [#allocation8], 4294967280 }
   0xe   :  { %20 = sfence }
   0xf   :  { %s2347_s14 = smov 0   ;;  %s2349_s15 = smov 0  }
  0x10   :  { %s2351_s16 = smov 0   ;;  %s2353_s0 = smov 0  }
  0x11   :  { %s2355_s17 = smov 0  }
  0x12 LB: > { %2629 = sst [smem:[#allocation11_spill]] %s2283_s0  ;;  %s35_s18 = sadd.s32 1, %s2279_s16  ;;  %s2287_s17 = sphi %s2355_s17, %s26_s17   ;;  %s2283_s0 = sphi %s2353_s0, %s2634_s0   ;;  %s2279_s16 = sphi %s2351_s16, %s2636_s16   ;;  %s2275_s15 = sphi %s2349_s15, %s2632_s15   ;;  %s2271_s14 = sphi %s2347_s14, %s2635_s14  }
  0x13   : > { %s38_s19 = sadd.s32 1, %s2283_s0  ;;  %p36_p5 = scmp.ge.s32.totalorder %s35_s18, 2 }
  0x14   : > { %p1723_p6 = scmp.ge.s32.totalorder %s2287_s17, 1  ;;  %p293_p7 = scmp.lt.s32.totalorder %s2287_s17, 5 }
  0x15   : > { %s2638_s18 = smov (%p36_p5, %s35_s18), 0  ;;  %s2640_s19 = smov (!%p36_p5, %s38_s19), %s2283_s0 }
  0x16   : > { %2630 = sst [smem:[#allocation12_spill]] %s2638_s18  ;;  %p294_p8 = pnand %p1723_p6, %p293_p7 }
  0x17   : > { %p40_p9 = scmp.ge.s32.totalorder %s2640_s19, 2  ;;  %s1724_s20 = sshll.u32 (!%p294_p8), %s2271_s14, 1 }
  0x18   : > { %297 = sbr.rel (%p294_p8) target bundleno = 1578 (0x62a), region = 44  ;;  %p340_p10 = scmp.lt.s32.totalorder (!%p294_p8), %s2275_s15, 1 }
  0x19   : > { %s2642_s19 = smov (%p40_p9, %s2640_s19), 0  ;;  %p342_p11 = scmp.lt.s32.totalorder (!%p294_p8), %s1724_s20, 3 }
  0x1a   : > { %2631 = sst [smem:[#allocation13_spill]] %s2642_s19  ;;  %p1731_p12 = scmp.ne.s32.totalorder (!%p294_p8), %s2271_s14, 0 }
  0x1f   : > { %s2384_s21 = scalar_select %p340_p10, %s2275_s15, 1 }
  0x20   : > { %s2644_s20 = smov (!%p342_p11, %s1724_s20), 3  ;;  %366 = sbr.rel (%p1731_p12) target bundleno = 608 (0x260), region = 48 }
  0x21   : > { %s1725_s22 = sshll.u32 %s2384_s21, 2  ;;  %s1775_s23 = sshll.u32 %s2384_s21, 7  ;;  %v369_v0 = vlaneseq (!%p1731_p12)  ;;  %v2290_v2 = vmov (!%p1731_p12), 0.0   ;;  %v2177_v3 = vld [vmem:[%s2620_s2] sm:$0xff] (!%p1731_p12)   ;;  %v2178_v5 = vld [vmem:[%s2620_s2 + $0x8] sm:$0xff] (!%p1731_p12)   ;;  %v2179_v12 = vld [vmem:[%s2620_s2 + $0x10] sm:$0xff] (!%p1731_p12)  }
  0x22   : > { %s345_s24 = sadd.s32 %s1725_s22, %s2644_s20  ;;  %s2391_s27 = scalar_lea.vmem %s2625_s7, %s1775_s23  ;;  %796 = vst [vmem:[#allocation5] sm:$0x1] (!%p1731_p12), %v2290_v2  ;;  %797 = vst [vmem:[#allocation6] sm:$0xff] (!%p1731_p12), %v2290_v2  ;;  %1903 = vmatprep.subr.bf16.mxu0 (!%p1731_p12), %v2177_v3  ;;  %v2180_v19 = vld [vmem:[%s2620_s2 + $0x18] sm:$0xff] (!%p1731_p12)   ;;  %v2181_v23 = vld [vmem:[%s2623_s5] sm:$0xff] (!%p1731_p12)   ;;  %vm450_vm8 = vcmask (!%p1731_p12), 523264  }
  0x23   : > { %s1726_s28 = sshll.u32 %s345_s24, 2  ;;  %s1776_s29 = sshll.u32 %s2384_s21, 5  ;;  %798 = vst [vmem:[#allocation6 + $0x8] sm:$0xff] (!%p1731_p12), %v2290_v2  ;;  %799 = vst [vmem:[#allocation6 + $0x10] sm:$0xff] (!%p1731_p12), %v2290_v2  ;;  %v370_v4 = vshrl.u32 (!%p1731_p12), %v369_v0, 7  ;;  %1904 = vmatpush3.bf16.msra.mxu0 (!%p1731_p12), %v2177_v3  ;;  %v2182_v27 = vld [vmem:[%s2623_s5 + $0x8] sm:$0xff] (!%p1731_p12)   ;;  %2099 = vmatprep.subr.bf16.mxu1 (!%p1731_p12), %v2181_v23 }
  0x24   : > { %s2397_s11 = scalar_lea.vmem %s2621_s3, %s1726_s28  ;;  %s2402_s19 = scalar_lea.vmem %s2626_s8, %s1776_s29  ;;  %800 = vst [vmem:[#allocation6 + $0x18] sm:$0xff] (!%p1731_p12), %v2290_v2  ;;  %801 = vst [vmem:[#allocation6 + $0x20] sm:$0xff] (!%p1731_p12), %v2290_v2  ;;  %1905 = vmatprep.subr.bf16.mxu0 (!%p1731_p12), %v2178_v5  ;;  %2107 = vmatpush3.bf16.msra.mxu1 (!%p1731_p12), %v2181_v23  ;;  %v2183_v29 = vld [vmem:[%s2623_s5 + $0x10] sm:$0xff] (!%p1731_p12)   ;;  %v2184_v30 = vld [vmem:[%s2623_s5 + $0x18] sm:$0xff] (!%p1731_p12)  }
  0x25   : > { %s361_s20 = scalar_lea.vmem %s2627_s9, %s2384_s21  ;;  %s367_s24 = scalar_lea.vmem (!%p1731_p12), %s2619_s1, %s2275_s15  ;;  %802 = vst [vmem:[#allocation6 + $0x28] sm:$0xff] (!%p1731_p12), %v2290_v2  ;;  %803 = vst [vmem:[#allocation6 + $0x30] sm:$0xff] (!%p1731_p12), %v2290_v2  ;;  %v371_v6 = vadd.s32 (!%p1731_p12), 8, %v370_v4  ;;  %v372_v7 = vadd.s32 (!%p1731_p12), 16, %v370_v4  ;;  %v373_v8 = vadd.s32 (!%p1731_p12), 24, %v370_v4  ;;  %v374_v10 = vadd.s32 (!%p1731_p12), 32, %v370_v4  ;;  %2100 = vmatprep.subr.bf16.mxu1 (!%p1731_p12), %v2182_v27 }
  0x26   : > { %v1732_v1 = vld [vmem:[%s367_s24] ss:$0 sm:$0xff] (!%p1731_p12)  ;;  %804 = vst [vmem:[#allocation6 + $0x38] sm:$0xff] (!%p1731_p12), %v2290_v2  ;;  %805 = vst [vmem:[#allocation6 + $0x40] sm:$0xff] (!%p1731_p12), %v2290_v2  ;;  %v375_v11 = vadd.s32 (!%p1731_p12), 40, %v370_v4  ;;  %v376_v17 = vadd.s32 (!%p1731_p12), 48, %v370_v4 }
  0x27   : > { %806 = vst [vmem:[#allocation6 + $0x48] sm:$0xff] %v2290_v2  ;;  %807 = vst [vmem:[#allocation6 + $0x50] sm:$0xff] %v2290_v2  ;;  %vm382_vm0 = vcmp.eq.s32.totalorder %v370_v4, %v1732_v1  ;;  %vm383_vm1 = vcmp.eq.s32.totalorder %v371_v6, %v1732_v1  ;;  %vm384_vm2 = vcmp.eq.s32.totalorder %v372_v7, %v1732_v1  ;;  %v377_v18 = vadd.s32 56, %v370_v4  ;;  %v2185_v31 = vld [vmem:[%s2623_s5 + $0x20] sm:$0xff]   ;;  %v2186_v40 = vld [vmem:[%s2623_s5 + $0x28] sm:$0xff]  }
  0x28   : > { %808 = vst [vmem:[#allocation6 + $0x58] sm:$0xff] %v2290_v2  ;;  %809 = vst [vmem:[#allocation6 + $0x60] sm:$0xff] %v2290_v2  ;;  %v390_v9 = vsel %vm382_vm0, 1.0, %v2290_v2  ;;  %vm385_vm3 = vcmp.eq.s32.totalorder %v373_v8, %v1732_v1  ;;  %v391_v13 = vsel %vm383_vm1, 1.0, %v2290_v2  ;;  %v392_v14 = vsel %vm384_vm2, 1.0, %v2290_v2  ;;  %1906 = vmatpush3.bf16.msra.mxu0 %v2178_v5  ;;  %2108 = vmatpush3.bf16.msra.mxu1 %v2182_v27  ;;  %v2187_v41 = vld [vmem:[%s2623_s5 + $0x30] sm:$0xff]  }
  0x29   : > { %810 = vst [vmem:[#allocation6 + $0x68] sm:$0xff] %v2290_v2  ;;  %811 = vst [vmem:[#allocation6 + $0x70] sm:$0xff] %v2290_v2  ;;  %v393_v15 = vsel %vm385_vm3, 1.0, %v2290_v2  ;;  %vm386_vm4 = vcmp.eq.s32.totalorder %v374_v10, %v1732_v1  ;;  %v398_v16 = vpack.c.bf16 %v391_v13, %v390_v9  ;;  %vm387_vm5 = vcmp.eq.s32.totalorder %v375_v11, %v1732_v1  ;;  %v2188_v42 = vld [vmem:[%s2623_s5 + $0x38] sm:$0xff]  }
  0x2a   : > { %812 = vst [vmem:[#allocation6 + $0x78] sm:$0xff] %v2290_v2  ;;  %1907 = vmatprep.subr.bf16.mxu0 %v2179_v12  ;;  %v399_v20 = vpack.c.bf16 %v393_v15, %v392_v14  ;;  %v394_v21 = vsel %vm386_vm4, 1.0, %v2290_v2  ;;  %v395_v22 = vsel %vm387_vm5, 1.0, %v2290_v2  ;;  %vm388_vm6 = vcmp.eq.s32.totalorder %v376_v17, %v1732_v1  ;;  %2101 = vmatprep.subr.bf16.mxu1 %v2183_v29 }
  0x2b   : > { %410 = vxpose.xlu0.c.b16.start [1/4] (short) %v398_v16, 128  ;;  %vm389_vm7 = vcmp.eq.s32.totalorder %v377_v18, %v1732_v1  ;;  %v400_v24 = vpack.c.bf16 %v395_v22, %v394_v21  ;;  %v396_v25 = vsel %vm388_vm6, 1.0, %v2290_v2 }
  0x2c   : > { %1908 = vmatpush3.bf16.msra.mxu0 %v2179_v12  ;;  %v397_v26 = vsel %vm389_vm7, 1.0, %v2290_v2  ;;  %2109 = vmatpush3.bf16.msra.mxu1 %v2183_v29 }
  0x2d   : > { %1909 = vmatprep.subr.bf16.mxu0 %v2180_v19  ;;  %v401_v28 = vpack.c.bf16 %v397_v26, %v396_v25  ;;  %2102 = vmatprep.subr.bf16.mxu1 %v2184_v30 }
  0x2f   : > { %411 = vxpose.xlu0.c.b16.cont [2/4] (short) %v399_v20, 128 }
  0x30   : > { %1910 = vmatpush3.bf16.msra.mxu0 %v2180_v19  ;;  %2110 = vmatpush3.bf16.msra.mxu1 %v2184_v30 }
  0x31   : > { %1927 = vmatprep.subr.bf16.mxu0 %v2181_v23  ;;  %2103 = vmatprep.subr.bf16.mxu1 %v2185_v31 }
  0x33   : > { %412 = vxpose.xlu0.c.b16.cont [3/4] (short) %v400_v24, 128  ;;  %v2291_v24 = vmov -1e+30  }
  0x34   : > { %2111 = vmatpush3.bf16.msra.mxu1 %v2185_v31  ;;  %795 = vst [vmem:[#allocation4] sm:$0x1] %v2291_v24 }
  0x35   : > { %2104 = vmatprep.subr.bf16.mxu1 %v2186_v40 }
  0x37   : > { %413 = vxpose.xlu0.c.b16.end [4/4] (short) %v401_v28, 128 }
  0x38   : > { %2112 = vmatpush3.bf16.msra.mxu1 %v2186_v40 }
  0x39   : > { %2105 = vmatprep.subr.bf16.mxu1 %v2187_v41 }
  0x3c   : > { %2113 = vmatpush3.bf16.msra.mxu1 %v2187_v41 }
  0x3d   : > { %2106 = vmatprep.subr.bf16.mxu1 %v2188_v42 }
  0x40   : > { %2114 = vmatpush3.bf16.msra.mxu1 %v2188_v42 }
  0x91   : > { %v418_v32 = vpop.trf.xlu0 }
  0x92   : > { %1911 = vmatprep.mubr.msk.bf16.mxu0 %vm450_vm8, %v418_v32 }
  0x95   : > { %v419_v33 = vpop.trf.xlu0 }
  0x96   : > { %1912 = vmatmul.mubr.msk.bf16.vlgmr.msra.gmra.mrb[0].mxu0 %vm450_vm8, %v419_v33 }
  0x97   : > { %1928 = vmatpush3.bf16.msra.mxu0 %v2181_v23 }
  0x98   : > { %1929 = vmatprep.subr.bf16.mxu0 %v2182_v27 }
  0x99   : > { %v420_v34 = vpop.trf.xlu0 }
  0x9a   : > { %1915 = vmatprep.mubr.msk.bf16.mxu0 %vm450_vm8, %v420_v34 }
  0x9b   : > { %1930 = vmatpush3.bf16.msra.mxu0 %v2182_v27 }
  0x9c   : > { %1931 = vmatprep.subr.bf16.mxu0 %v2183_v29 }
  0x9d   : > { %v421_v35 = vpop.trf.xlu0 }
  0x9e   : > { %1916 = vmatmul.mubr.msk.bf16.gmra.mrb[4].mxu0 %vm450_vm8, %v421_v35 }
  0x9f   : > { %1932 = vmatpush3.bf16.msra.mxu0 %v2183_v29 }
  0xa0   : > { %1933 = vmatprep.subr.bf16.mxu0 %v2184_v30 }
  0xa1   : > { %v422_v36 = vpop.trf.xlu0 }
  0xa2   : > { %1919 = vmatprep.mubr.msk.bf16.mxu0 %vm450_vm8, %v422_v36 }
  0xa3   : > { %1934 = vmatpush3.bf16.msra.mxu0 %v2184_v30 }
  0xa4   : > { %1935 = vmatprep.subr.bf16.mxu0 %v2185_v31 }
  0xa5   : > { %v423_v37 = vpop.trf.xlu0 }
  0xa6   : > { %1920 = vmatmul.mubr.msk.bf16.gmra.mrb[8].mxu0 %vm450_vm8, %v423_v37 }
  0xa7   : > { %1936 = vmatpush3.bf16.msra.mxu0 %v2185_v31 }
  0xa8   : > { %1937 = vmatprep.subr.bf16.mxu0 %v2186_v40 }
  0xa9   : > { %v424_v38 = vpop.trf.xlu0 }
  0xaa   : > { %1923 = vmatprep.mubr.msk.bf16.mxu0 %vm450_vm8, %v424_v38 }
  0xab   : > { %1938 = vmatpush3.bf16.msra.mxu0 %v2186_v40 }
  0xac   : > { %1939 = vmatprep.subr.bf16.mxu0 %v2187_v41 }
  0xad   : > { %v425_v39 = vpop.trf.xlu0 }
  0xae   : > { %1924 = vmatmul.mubr.msk.bf16.gmra.mrb[12].mxu0 %vm450_vm8, %v425_v39 }
  0xaf   : > { %1940 = vmatpush3.bf16.msra.mxu0 %v2187_v41 }
  0xb0   : > { %1941 = vmatprep.subr.bf16.mxu0 %v2188_v42 }
  0xb3   : > { %1942 = vmatpush3.bf16.msra.mxu0 %v2188_v42 }
 0x169   : > { %v1913_v43 = vpop.f32.mrb[0].mxu0 }
 0x16a   : > { %v509_v44 = vpop.f32.mrb[1].mxu0 }
 0x16b   : > { %v1914_v45 = vpop.f32.mrb[2].mxu0 }
 0x16c   : > { %v573_v46 = vpack.c.bf16 %v1914_v45, %v1913_v43  ;;  %v512_v47 = vpop.f32.mrb[3].mxu0 }
 0x16d   : > { %v572_v48 = vpack.c.bf16 %v512_v47, %v509_v44  ;;  %v588_v49 = vadd.f32 %v512_v47, %v509_v44 }
 0x16e   : > { %581 = vst [vmem:[#allocation2 + $0x8] sm:$0xff] %v573_v46 }
 0x16f   : > { %580 = vst [vmem:[#allocation2] sm:$0xff] %v572_v48  ;;  %v589_v50 = vadd.f32 %v1913_v43, %v588_v49  ;;  %1943 = vmatprep.mubr.bf16.mxu0 %v572_v48 }
 0x170   : > { %1944 = vmatmul.mubr.bf16.vlgmr.msra.gmra.mrb[16].mxu0 %v573_v46 }
 0x171   : > { %v1917_v51 = vpop.f32.mrb[4].mxu0  ;;  %v590_v52 = vadd.f32 %v1914_v45, %v589_v50 }
 0x172   : > { %v525_v53 = vpop.f32.mrb[5].mxu0 }
 0x173   : > { %v591_v54 = vadd.f32 %v590_v52, %v525_v53  ;;  %v1918_v55 = vpop.f32.mrb[6].mxu0 }
 0x174   : > { %v575_v56 = vpack.c.bf16 %v1918_v55, %v1917_v51  ;;  %v528_v57 = vpop.f32.mrb[7].mxu0 }
 0x175   : > { %v574_v58 = vpack.c.bf16 %v528_v57, %v525_v53  ;;  %v592_v59 = vadd.f32 %v591_v54, %v528_v57 }
 0x176   : > { %583 = vst [vmem:[#allocation2 + $0x18] sm:$0xff] %v575_v56 }
 0x177   : > { %582 = vst [vmem:[#allocation2 + $0x10] sm:$0xff] %v574_v58  ;;  %v593_v60 = vadd.f32 %v1917_v51, %v592_v59  ;;  %1947 = vmatprep.mubr.bf16.mxu1 %v574_v58 }
 0x178   : > { %1948 = vmatmul.mubr.bf16.vlgmr.msra.gmra.mrb[0].mxu1 %v575_v56 }
 0x179   : > { %v1921_v61 = vpop.f32.mrb[8].mxu0  ;;  %v594_v62 = vadd.f32 %v1918_v55, %v593_v60 }
 0x17a   : > { %v541_v63 = vpop.f32.mrb[9].mxu0 }
 0x17b   : > { %v595_v0 = vadd.f32 %v594_v62, %v541_v63  ;;  %v1922_v1 = vpop.f32.mrb[10].mxu0 }
 0x17c   : > { %v577_v2 = vpack.c.bf16 %v1922_v1, %v1921_v61  ;;  %v544_v3 = vpop.f32.mrb[11].mxu0 }
 0x17d   : > { %v576_v4 = vpack.c.bf16 %v544_v3, %v541_v63  ;;  %v596_v5 = vadd.f32 %v595_v0, %v544_v3 }
 0x17e   : > { %585 = vst [vmem:[#allocation2 + $0x28] sm:$0xff] %v577_v2 }
 0x17f   : > { %584 = vst [vmem:[#allocation2 + $0x20] sm:$0xff] %v576_v4  ;;  %v597_v6 = vadd.f32 %v1921_v61, %v596_v5  ;;  %1951 = vmatprep.mubr.bf16.mxu1 %v576_v4 }
 0x180   : > { %1952 = vmatmul.mubr.bf16.gmra.mrb[4].mxu1 %v577_v2 }
 0x181   : > { %v1925_v7 = vpop.f32.mrb[12].mxu0  ;;  %v598_v8 = vadd.f32 %v1922_v1, %v597_v6 }
 0x182   : > { %v557_v9 = vpop.f32.mrb[13].mxu0 }
 0x183   : > { %v599_v10 = vadd.f32 %v598_v8, %v557_v9  ;;  %v1926_v11 = vpop.f32.mrb[14].mxu0 }
 0x184   : > { %v579_v12 = vpack.c.bf16 %v1926_v11, %v1925_v7  ;;  %v560_v13 = vpop.f32.mrb[15].mxu0 }
 0x185   : > { %v578_v14 = vpack.c.bf16 %v560_v13, %v557_v9  ;;  %v600_v15 = vadd.f32 %v599_v10, %v560_v13 }
 0x186   : > { %587 = vst [vmem:[#allocation2 + $0x38] sm:$0xff] %v579_v12 }
 0x187   : > { %586 = vst [vmem:[#allocation2 + $0x30] sm:$0xff] %v578_v14  ;;  %v601_v16 = vadd.f32 %v1925_v7, %v600_v15  ;;  %1955 = vmatprep.mubr.bf16.mxu1 %v578_v14 }
 0x188   : > { %1956 = vmatmul.mubr.bf16.gmra.mrb[8].mxu1 %v579_v12 }
 0x189   : > { %v602_v17 = vadd.f32 %v1926_v11, %v601_v16 }
 0x18b   : > { %v603_v18 = vrot.slane %v602_v17, 4 }
 0x18d   : > { %v604_v19 = vadd.f32 %v603_v18, %v602_v17 }
 0x18f   : > { %v605_v20 = vrot.slane %v604_v19, 2 }
 0x191   : > { %v606_v21 = vadd.f32 %v605_v20, %v604_v19 }
 0x193   : > { %v607_v22 = vrot.slane %v606_v21, 1 }
 0x195   : > { %v608_v23 = vadd.f32 %v607_v22, %v606_v21 }
 0x197   : > { %609 = vst [vmem:[%s361_s20] sm:$0x1] %v608_v23 }
 0x243   : > { %v1945_v25 = vpop.f32.mrb[16].mxu0 }
 0x244   : > { %781 = vst [vmem:[#allocation3 + $0x10] sm:$0xff] %v1945_v25  ;;  %v716_v26 = vpop.f32.mrb[17].mxu0 }
 0x245   : > { %779 = vst [vmem:[#allocation3] sm:$0xff] %v716_v26  ;;  %v1946_v27 = vpop.f32.mrb[18].mxu0 }
 0x246   : > { %782 = vst [vmem:[#allocation3 + $0x18] sm:$0xff] %v1946_v27  ;;  %v719_v28 = vpop.f32.mrb[19].mxu0 }
 0x247   : > { %780 = vst [vmem:[#allocation3 + $0x8] sm:$0xff] %v719_v28 }
 0x24b   : > { %v1949_v29 = vpop.f32.mrb[0].mxu1 }
 0x24c   : > { %785 = vst [vmem:[#allocation3 + $0x30] sm:$0xff] %v1949_v29  ;;  %v732_v30 = vpop.f32.mrb[1].mxu1 }
 0x24d   : > { %783 = vst [vmem:[#allocation3 + $0x20] sm:$0xff] %v732_v30  ;;  %v1950_v31 = vpop.f32.mrb[2].mxu1 }
 0x24e   : > { %786 = vst [vmem:[#allocation3 + $0x38] sm:$0xff] %v1950_v31  ;;  %v735_v32 = vpop.f32.mrb[3].mxu1 }
 0x24f   : > { %784 = vst [vmem:[#allocation3 + $0x28] sm:$0xff] %v735_v32 }
 0x253   : > { %v1953_v33 = vpop.f32.mrb[4].mxu1 }
 0x254   : > { %789 = vst [vmem:[#allocation3 + $0x50] sm:$0xff] %v1953_v33  ;;  %v748_v34 = vpop.f32.mrb[5].mxu1 }
 0x255   : > { %787 = vst [vmem:[#allocation3 + $0x40] sm:$0xff] %v748_v34  ;;  %v1954_v35 = vpop.f32.mrb[6].mxu1 }
 0x256   : > { %790 = vst [vmem:[#allocation3 + $0x58] sm:$0xff] %v1954_v35  ;;  %v751_v36 = vpop.f32.mrb[7].mxu1 }
 0x257   : > { %788 = vst [vmem:[#allocation3 + $0x48] sm:$0xff] %v751_v36 }
 0x25b   : > { %v1957_v37 = vpop.f32.mrb[8].mxu1 }
 0x25c   : > { %793 = vst [vmem:[#allocation3 + $0x70] sm:$0xff] %v1957_v37  ;;  %v764_v38 = vpop.f32.mrb[9].mxu1 }
 0x25d   : > { %791 = vst [vmem:[#allocation3 + $0x60] sm:$0xff] %v764_v38  ;;  %v1958_v39 = vpop.f32.mrb[10].mxu1 }
 0x25e   : > { %794 = vst [vmem:[#allocation3 + $0x78] sm:$0xff] %v1958_v39  ;;  %v767_v40 = vpop.f32.mrb[11].mxu1 }
 0x25f   : > { %792 = vst [vmem:[#allocation3 + $0x68] sm:$0xff] %v767_v40 }
 0x260 PF: > { %v815_v41 = vld [vmem:[#allocation2] sm:$0xff]  ;;  %v2292_v42 = vmov 0.0   ;;  %vm2293_vm9 = vmmov 0   ;;  %v816_v46 = vld [vmem:[#allocation2 + $0x8] sm:$0xff]  ;;  %v817_v47 = vld [vmem:[#allocation2 + $0x10] sm:$0xff]  ;;  %vm996_vm10 = vcmask 130048   ;;  %v873_v54 = vlaneseq }
 0x261   : > { %1959 = vmatprep.subr.bf16.mxu0 %v2292_v42  ;;  %1975 = vmatprep.mubr.msk.bf16.mxu0 %vm2293_vm9, %v2292_v42  ;;  %v813_v43 = vld [vmem:[%s2397_s11] sm:$0xff]   ;;  %v818_v48 = vld [vmem:[#allocation2 + $0x18] sm:$0xff]  ;;  %v820_v50 = vld [vmem:[#allocation2 + $0x28] sm:$0xff]  ;;  %s879_s21 = sld [smem:[#allocation9 + %s2275_s15]]  ;;  %s1754_s11 = sshll.u32 %s2271_s14, 4 }
 0x262   : > { %1960 = vmatpush3.bf16.xpose.msra.mxu0 %v815_v41  ;;  %v962_v44 = vunpack.c.l.bf16 %v813_v43  ;;  %v963_v45 = vunpack.c.h.bf16 %v813_v43  ;;  %v819_v49 = vld [vmem:[#allocation2 + $0x20] sm:$0xff]  ;;  %v821_v51 = vld [vmem:[#allocation2 + $0x30] sm:$0xff]  ;;  %v822_v52 = vld [vmem:[#allocation2 + $0x38] sm:$0xff]  ;;  %v874_v56 = vshrl.u32 %v873_v54, 7  ;;  %v876_v59 = vstv %s1754_s11  ;;  %s1226_s15 = scalar_lea.vmem [#allocation7], %s2271_s14  ;;  %s1223_s20 = scalar_lea.vmem %s2402_s19, %s1754_s11 }
 0x263   : > { %1961 = vmatprep.subr.bf16.mxu0 %v2292_v42  ;;  %v889_v16 = vld [vmem:[#allocation4] sm:$0x1]  ;;  %p1771_p13 = scmp.ne.s32.totalorder %s2271_s14, 1 }
 0x264   : > { %964 = vxpose.xlu0.b32.start [1/2] (short) %v962_v44, 128  ;;  %v875_v58 = vadd.s32 8, %v874_v56  ;;  %v877_v60 = vadd.s32 %v876_v59, %v874_v56  ;;  %v2470_v19 = vsub.s32 0, %v874_v56 }
 0x266   : > { %v878_v61 = vadd.s32 %v876_v59, %v875_v58 }
 0x267   : > { %v880_v62 = vstv %s879_s21 }
 0x268   : > { %965 = vxpose.xlu0.b32.end [2/2] (short) %v963_v45, 128  ;;  %vm881_vm11 = vcmp.lt.s32.totalorder %v877_v60, %v880_v62  ;;  %vm882_vm12 = vcmp.lt.s32.totalorder %v878_v61, %v880_v62  ;;  %v926_v60 = vld [vmem:[#allocation6 + $0x10] sm:$0xff] }
 0x26a   : > { %1962 = vmatpush3.bf16.xpose.msra.mxu0 %v816_v46 }
 0x26b   : > { %1963 = vmatprep.subr.bf16.mxu0 %v2292_v42 }
 0x272   : > { %1964 = vmatpush3.bf16.xpose.msra.mxu0 %v817_v47 }
 0x273   : > { %1965 = vmatprep.subr.bf16.mxu0 %v2292_v42 }
 0x27a   : > { %1966 = vmatpush3.bf16.xpose.msra.mxu0 %v818_v48 }
 0x27b   : > { %1967 = vmatprep.subr.bf16.mxu0 %v2292_v42 }
 0x282   : > { %1968 = vmatpush3.bf16.xpose.msra.mxu0 %v819_v49 }
 0x283   : > { %1969 = vmatprep.subr.bf16.mxu0 %v2292_v42 }
 0x28a   : > { %1970 = vmatpush3.bf16.xpose.msra.mxu0 %v820_v50 }
 0x28b   : > { %1971 = vmatprep.subr.bf16.mxu0 %v2292_v42 }
 0x292   : > { %1972 = vmatpush3.bf16.xpose.msra.mxu0 %v821_v51 }
 0x293   : > { %1973 = vmatprep.subr.bf16.mxu0 %v2292_v42 }
 0x29a   : > { %1974 = vmatpush3.bf16.xpose.msra.mxu0 %v822_v52  ;;  %v925_v52 = vld [vmem:[#allocation6 + $0x8] sm:$0xff] }
 0x2a1   : > { %1976 = vmatmul.mubr.bf16.vlgmr.msra.gmra.mrb[0].mxu0 %v813_v43  ;;  %v913_v43 = vld [vmem:[#allocation5] sm:$0x1] }
 0x2e4   : > { %v980_v53 = vpop.trf.xlu0 }
 0x2e5   : > { %1983 = vmatprep.mubr.msk.f32.mxu1 %vm996_vm10, %v980_v53  ;;  %v924_v53 = vld [vmem:[#allocation6] sm:$0xff] }
 0x2e8   : > { %v2464_v55 = vpop.trf.xlu0 }
 0x2ec   : > { %v982_v57 = vpop.trf.xlu0 }
 0x2f0   : > { %v983_v63 = vpop.trf.xlu0 }
 0x2f4   : > { %v984_v8 = vpop.trf.xlu0 }
 0x2f8   : > { %v985_v12 = vpop.trf.xlu0 }
 0x2fc   : > { %v986_v17 = vpop.trf.xlu0 }
 0x300   : > { %v987_v23 = vpop.trf.xlu0 }
 0x304   : > { %v988_v29 = vpop.trf.xlu0 }
 0x308   : > { %v989_v30 = vpop.trf.xlu0 }
 0x30c   : > { %v990_v37 = vpop.trf.xlu0 }
 0x310   : > { %v991_v41 = vpop.trf.xlu0 }
 0x314   : > { %v992_v47 = vpop.trf.xlu0 }
 0x318   : > { %v993_v49 = vpop.trf.xlu0 }
 0x31c   : > { %v994_v50 = vpop.trf.xlu0 }
 0x320   : > { %v995_v51 = vpop.trf.xlu0 }
 0x374   : > { %v863_v0 = vpop.f32.mrb[0].mxu0 }
 0x375   : > { %v870_v1 = vmul.f32 0.088388346, %v863_v0  ;;  %v1977_v2 = vpop.f32.mrb[1].mxu0 }
 0x376   : > { %v866_v3 = vpop.f32.mrb[2].mxu0 }
 0x377   : > { %v871_v4 = vmul.f32 0.088388346, %v866_v3  ;;  %v1978_v5 = vpop.f32.mrb[3].mxu0  ;;  %v887_v6 = vsel %vm881_vm11, %v870_v1, -1e+30  ;;  %v929_v1 = vld [vmem:[#allocation6 + $0x28] sm:$0xff] }
 0x379   : > { %v888_v7 = vsel %vm882_vm12, %v871_v4, -1e+30  ;;  %v928_v4 = vld [vmem:[#allocation6 + $0x20] sm:$0xff] }
 0x37a   : > { %v890_v9 = vmax.f32 %v887_v6, %v888_v7 }
 0x37c   : > { %v891_v10 = vrot.slane %v890_v9, 4 }
 0x37e   : > { %v892_v11 = vmax.f32 %v890_v9, %v891_v10  ;;  %v931_v9 = vld [vmem:[#allocation6 + $0x38] sm:$0xff] }
 0x380   : > { %v893_v13 = vrot.slane %v892_v11, 2 }
 0x382   : > { %v894_v14 = vmax.f32 %v892_v11, %v893_v13 }
 0x384   : > { %v895_v15 = vrot.slane %v894_v14, 1 }
 0x386   : > { %v896_v18 = vmax.f32 %v894_v14, %v895_v15 }
 0x388   : > { %v897_v20 = vmax.f32 %v889_v16, %v896_v18 }
 0x38a   : > { %v898_v21 = vsub.f32 %v889_v16, %v897_v20  ;;  %v905_v22 = vrot.slane %v897_v20, %v2470_v19  ;;  %1222 = vst [vmem:[#allocation4] sm:$0x1] %v897_v20  ;;  %1227 = vst [vmem:[%s1226_s15] sm:$0x1] %v897_v20 }
 0x38c   : > { %v899_v24 = vmul.f32 1.442695, %v898_v21  ;;  %v907_v25 = vsub.f32 %v887_v6, %v905_v22  ;;  %v908_v26 = vsub.f32 %v888_v7, %v905_v22  ;;  %v932_v21 = vld [vmem:[#allocation6 + $0x40] sm:$0xff] }
 0x38e   : > { %2191 = vpow2.f32 %v899_v24  ;;  %v909_v27 = vmul.f32 1.442695, %v907_v25  ;;  %v911_v28 = vmul.f32 1.442695, %v908_v26  ;;  %v935_v26 = vld [vmem:[#allocation6 + $0x58] sm:$0xff] }
 0x390   : > { %2193 = vpow2.f32 %v909_v27 }
 0x391   : > { %2195 = vpow2.f32 %v911_v28 }
 0x398   : > { %v2192_v31 = vpop.eup %2191 }
 0x399   : > { %v2478_v32 = vrot.slane %v2192_v31, %v2470_v19  ;;  %v914_v45 = vmul.f32 %v2192_v31, %v913_v43  ;;  %v939_v43 = vld [vmem:[#allocation6 + $0x78] sm:$0xff] }
 0x39a   : > { %v2194_v33 = vpop.eup %2193 }
 0x39b   : > { %v2196_v34 = vpop.eup %2195  ;;  %1224 = vst [vmem:[%s1223_s20] sm:$0xff] %v2194_v33  ;;  %v947_v54 = vmul.f32 %v2478_v32, %v925_v52  ;;  %v946_v56 = vmul.f32 %v2478_v32, %v924_v53  ;;  %v948_v0 = vmul.f32 %v2478_v32, %v926_v60  ;;  %v951_v6 = vmul.f32 %v2478_v32, %v929_v1 }
 0x39c   : > { %v915_v35 = vadd.f32 %v2196_v34, %v2194_v33  ;;  %1225 = vst [vmem:[%s1223_s20 + $0x8] sm:$0xff] %v2196_v34  ;;  %v2063_v36 = vpack.c.bf16 %v2196_v34, %v2194_v33  ;;  %v953_v14 = vmul.f32 %v2478_v32, %v931_v9  ;;  %v954_v25 = vmul.f32 %v2478_v32, %v932_v21  ;;  %v1811_v9 = vld [vmem:[%s2622_s4 + $0x18] sm:$0xff] (!%p1771_p13)  }
 0x39d   : > { %v957_v31 = vmul.f32 %v2478_v32, %v935_v26 }
 0x39e   : > { %v916_v38 = vrot.slane %v915_v35, 4  ;;  %2064 = vmatprep.subr.bf16.mxu1 %v2063_v36 }
 0x39f   : > { %2066 = vmatpush3.bf16.msra.mxu1 %v2063_v36 }
 0x3a0   : > { %v917_v39 = vadd.f32 %v916_v38, %v915_v35  ;;  %v937_v35 = vld [vmem:[#allocation6 + $0x68] sm:$0xff]  ;;  %v936_v38 = vld [vmem:[#allocation6 + $0x60] sm:$0xff] }
 0x3a2   : > { %v918_v40 = vrot.slane %v917_v39, 2  ;;  %1984 = vmatmul.mubr.msk.f32.vlgmr.msra.gmra.mrb[0].mxu1 %vm996_vm10, %v2464_v55 }
 0x3a3   : > { %1986 = vmatprep.mubr.msk.f32.mxu1 %vm996_vm10, %v982_v57  ;;  %v927_v57 = vld [vmem:[#allocation6 + $0x18] sm:$0xff] }
 0x3a4   : > { %v919_v42 = vadd.f32 %v918_v40, %v917_v39  ;;  %v949_v62 = vmul.f32 %v2478_v32, %v927_v57  ;;  %v959_v40 = vmul.f32 %v2478_v32, %v937_v35  ;;  %v1555_v57 = vld [vmem:[#allocation7] sm:$0x1] (!%p1771_p13) }
 0x3a6   : > { %v920_v44 = vrot.slane %v919_v42, 1  ;;  %1987 = vmatmul.mubr.msk.f32.gmra.mrb[2].mxu1 %vm996_vm10, %v983_v63 }
 0x3a7   : > { %1989 = vmatprep.mubr.msk.f32.mxu1 %vm996_vm10, %v984_v8  ;;  %v950_v8 = vmul.f32 %v2478_v32, %v928_v4 }
 0x3a8   : > { %v921_v46 = vadd.f32 %v920_v44, %v919_v42  ;;  %v958_v42 = vmul.f32 %v2478_v32, %v936_v38 }
 0x3aa   : > { %v922_v48 = vadd.f32 %v921_v46, %v914_v45  ;;  %1990 = vmatmul.mubr.msk.f32.gmra.mrb[4].mxu1 %vm996_vm10, %v985_v12  ;;  %v930_v12 = vld [vmem:[#allocation6 + $0x30] sm:$0xff] }
 0x3ab   : > { %1992 = vmatprep.mubr.msk.f32.mxu1 %vm996_vm10, %v986_v17  ;;  %v952_v16 = vmul.f32 %v2478_v32, %v930_v12  ;;  %v933_v17 = vld [vmem:[#allocation6 + $0x48] sm:$0xff]  ;;  %v938_v46 = vld [vmem:[#allocation6 + $0x70] sm:$0xff] }
 0x3ac   : > { %923 = vst [vmem:[#allocation5] sm:$0x1] %v922_v48  ;;  %v961_v48 = vmul.f32 %v2478_v32, %v939_v43 }
 0x3ae   : > { %1993 = vmatmul.mubr.msk.f32.gmra.mrb[6].mxu1 %vm996_vm10, %v987_v23  ;;  %v955_v23 = vmul.f32 %v2478_v32, %v933_v17 }
 0x3af   : > { %1995 = vmatprep.mubr.msk.f32.mxu1 %vm996_vm10, %v988_v29  ;;  %v934_v29 = vld [vmem:[#allocation6 + $0x50] sm:$0xff] }
 0x3b0   : > { %v956_v34 = vmul.f32 %v2478_v32, %v934_v29  ;;  %v1814_v29 = vld [vmem:[%s2622_s4 + $0x30] sm:$0xff] (!%p1771_p13)  }
 0x3b2   : > { %1996 = vmatmul.mubr.msk.f32.gmra.mrb[8].mxu1 %vm996_vm10, %v989_v30 }
 0x3b3   : > { %1998 = vmatprep.mubr.msk.f32.mxu1 %vm996_vm10, %v990_v37 }
 0x3b6   : > { %1999 = vmatmul.mubr.msk.f32.gmra.mrb[10].mxu1 %vm996_vm10, %v991_v41 }
 0x3b7   : > { %2001 = vmatprep.mubr.msk.f32.mxu1 %vm996_vm10, %v992_v47 }
 0x3ba   : > { %2002 = vmatmul.mubr.msk.f32.gmra.mrb[12].mxu1 %vm996_vm10, %v993_v49 }
 0x3bb   : > { %2004 = vmatprep.mubr.msk.f32.mxu1 %vm996_vm10, %v994_v50  ;;  %v960_v50 = vmul.f32 %v2478_v32, %v938_v46  ;;  %v1778_v32 = vld [vmem:[%s2622_s4] sm:$0xff] (!%p1771_p13)  }
 0x3bc   : > { %2068 = vmatprep.subr.bf16.mxu0 (!%p1771_p13), %v1778_v32  ;;  %2115 = vmatprep.subr.bf16.mxu1 (!%p1771_p13), %v1778_v32 }
 0x3bd   : > { %2070 = vmatpush3.bf16.msra.mxu0 (!%p1771_p13), %v1778_v32  ;;  %2123 = vmatpush3.bf16.msra.mxu1 (!%p1771_p13), %v1778_v32 }
 0x3be   : > { %2005 = vmatmul.mubr.msk.f32.gmra.mrb[14].mxu1 %vm996_vm10, %v995_v51 }
 0x475   : > { %v1985_v55 = vpop.f32.mrb[0].mxu1 }
 0x476   : > { %v1191_v58 = vadd.f32 %v1985_v55, %v947_v54  ;;  %v1111_v59 = vpop.f32.mrb[1].mxu1  ;;  %v1232_v54 = vld [vmem:[#allocation5] sm:$0x1] (!%p1771_p13)  ;;  %v1554_v55 = vld [vmem:[#allocation4] sm:$0x1] (!%p1771_p13) }
 0x477   : > { %v1190_v61 = vadd.f32 %v1111_v59, %v946_v56  ;;  %v1233_v56 = vmax.f32 (!%p1771_p13), %v1232_v54, 1e-30  ;;  %v1570_v59 = vld [vmem:[#allocation7 + $0x1] sm:$0x1] (!%p1771_p13) }
 0x478   : > { %1207 = vst [vmem:[#allocation6 + $0x8] sm:$0xff] %v1191_v58  ;;  %v1556_v58 = vsub.f32 (!%p1771_p13), %v1555_v57, %v1554_v55  ;;  %v1571_v60 = vsub.f32 (!%p1771_p13), %v1570_v59, %v1554_v55 }
 0x479   : > { %1206 = vst [vmem:[#allocation6] sm:$0xff] %v1190_v61  ;;  %v1988_v63 = vpop.f32.mrb[2].mxu1  ;;  %2197 = vrcp.f32 (!%p1771_p13), %v1233_v56 }
 0x47a   : > { %v1193_v2 = vadd.f32 %v1988_v63, %v949_v62  ;;  %v1121_v3 = vpop.f32.mrb[3].mxu1  ;;  %v1557_v61 = vmul.f32 (!%p1771_p13), 1.442695, %v1556_v58  ;;  %v1572_v62 = vmul.f32 (!%p1771_p13), 1.442695, %v1571_v60  ;;  %v1809_v63 = vld [vmem:[%s2622_s4 + $0x8] sm:$0xff] (!%p1771_p13)  }
 0x47b   : > { %v1192_v5 = vadd.f32 %v1121_v3, %v948_v0  ;;  %2072 = vmatprep.subr.bf16.mxu0 (!%p1771_p13), %v1809_v63  ;;  %2116 = vmatprep.subr.bf16.mxu1 (!%p1771_p13), %v1809_v63  ;;  %v1810_v0 = vld [vmem:[%s2622_s4 + $0x10] sm:$0xff] (!%p1771_p13)  }
 0x47c   : > { %1209 = vst [vmem:[#allocation6 + $0x18] sm:$0xff] %v1193_v2  ;;  %2199 = vpow2.f32 (!%p1771_p13), %v1557_v61  ;;  %2074 = vmatpush3.bf16.msra.mxu0 (!%p1771_p13), %v1809_v63  ;;  %2124 = vmatpush3.bf16.msra.mxu1 (!%p1771_p13), %v1809_v63 }
 0x47d   : > { %1208 = vst [vmem:[#allocation6 + $0x10] sm:$0xff] %v1192_v5  ;;  %v1991_v7 = vpop.f32.mrb[4].mxu1  ;;  %2201 = vpow2.f32 (!%p1771_p13), %v1572_v62  ;;  %2076 = vmatprep.subr.bf16.mxu0 (!%p1771_p13), %v1810_v0  ;;  %2117 = vmatprep.subr.bf16.mxu1 (!%p1771_p13), %v1810_v0 }
 0x47e   : > { %v1195_v10 = vadd.f32 %v1991_v7, %v951_v6  ;;  %v1131_v11 = vpop.f32.mrb[5].mxu1 }
 0x47f   : > { %v1194_v13 = vadd.f32 %v1131_v11, %v950_v8  ;;  %v1237_v4 = vld [vmem:[#allocation6 + $0x8] sm:$0xff] (!%p1771_p13) }
 0x480   : > { %1211 = vst [vmem:[#allocation6 + $0x28] sm:$0xff] %v1195_v10  ;;  %v1236_v2 = vld [vmem:[#allocation6] sm:$0xff] (!%p1771_p13)  ;;  %2078 = vmatpush3.bf16.msra.mxu0 (!%p1771_p13), %v1810_v0  ;;  %2125 = vmatpush3.bf16.msra.mxu1 (!%p1771_p13), %v1810_v0 }
 0x481   : > { %1210 = vst [vmem:[#allocation6 + $0x20] sm:$0xff] %v1194_v13  ;;  %v1994_v15 = vpop.f32.mrb[6].mxu1  ;;  %v1560_v10 = vld [vmem:[%s2402_s19] sm:$0xff] (!%p1771_p13)  ;;  %v1561_v11 = vld [vmem:[%s2402_s19 + $0x8] sm:$0xff] (!%p1771_p13)  ;;  %2080 = vmatprep.subr.bf16.mxu0 (!%p1771_p13), %v1811_v9  ;;  %2118 = vmatprep.subr.bf16.mxu1 (!%p1771_p13), %v1811_v9 }
 0x482   : > { %v1197_v18 = vadd.f32 %v1994_v15, %v953_v14  ;;  %v1141_v20 = vpop.f32.mrb[7].mxu1  ;;  %v1575_v15 = vld [vmem:[%s2402_s19 + $0x10] sm:$0xff] (!%p1771_p13) }
 0x483   : > { %v1196_v22 = vadd.f32 %v1141_v20, %v952_v16  ;;  %v2198_v1 = vpop.eup (!%p1771_p13), %2197  ;;  %v1576_v16 = vld [vmem:[%s2402_s19 + $0x18] sm:$0xff] (!%p1771_p13) }
 0x484   : > { %1213 = vst [vmem:[#allocation6 + $0x38] sm:$0xff] %v1197_v18  ;;  %v2523_v3 = vrot.slane (!%p1771_p13), %v2198_v1, %v2470_v19  ;;  %v1238_v17 = vld [vmem:[#allocation6 + $0x10] sm:$0xff] (!%p1771_p13)  ;;  %v1239_v26 = vld [vmem:[#allocation6 + $0x18] sm:$0xff] (!%p1771_p13)  ;;  %2082 = vmatpush3.bf16.msra.mxu0 (!%p1771_p13), %v1811_v9  ;;  %2126 = vmatpush3.bf16.msra.mxu1 (!%p1771_p13), %v1811_v9 }
 0x485   : > { %1212 = vst [vmem:[#allocation6 + $0x30] sm:$0xff] %v1196_v22  ;;  %v1997_v24 = vpop.f32.mrb[8].mxu1  ;;  %v1812_v22 = vld [vmem:[%s2622_s4 + $0x20] sm:$0xff] (!%p1771_p13)  }
 0x486   : > { %v1199_v27 = vadd.f32 %v1997_v24, %v955_v23  ;;  %v1151_v28 = vpop.f32.mrb[9].mxu1  ;;  %v2200_v5 = vpop.eup (!%p1771_p13), %2199  ;;  %v1258_v6 = vmul.f32 (!%p1771_p13), %v2523_v3, %v1236_v2  ;;  %v1259_v13 = vmul.f32 (!%p1771_p13), %v2523_v3, %v1237_v4  ;;  %2084 = vmatprep.subr.bf16.mxu0 (!%p1771_p13), %v1812_v22  ;;  %2119 = vmatprep.subr.bf16.mxu1 (!%p1771_p13), %v1812_v22  ;;  %v2569_v9 = vld [vmem:[%s2624_s6] ss:$0 sm:$0xff] (!%p1771_p13) }
 0x487   : > { %v1198_v30 = vadd.f32 %v1151_v28, %v954_v25  ;;  %v2202_v7 = vpop.eup (!%p1771_p13), %2201  ;;  %v1559_v8 = vmul.f32 (!%p1771_p13), %v2200_v5, %v2198_v1  ;;  %v1260_v25 = vmul.f32 (!%p1771_p13), %v2523_v3, %v1238_v17 }
 0x488   : > { %1215 = vst [vmem:[#allocation6 + $0x48] sm:$0xff] %v1199_v27  ;;  %1322 = vxpose.xlu0.b32.start [1/16] (!%p1771_p13), %v1258_v6, 128  ;;  %v1574_v12 = vmul.f32 (!%p1771_p13), %v2202_v7, %v2198_v1  ;;  %v1261_v27 = vmul.f32 (!%p1771_p13), %v2523_v3, %v1239_v26  ;;  %v1240_v28 = vld [vmem:[#allocation6 + $0x20] sm:$0xff] (!%p1771_p13)  ;;  %2086 = vmatpush3.bf16.msra.mxu0 (!%p1771_p13), %v1812_v22 }
 0x489   : > { %1214 = vst [vmem:[#allocation6 + $0x40] sm:$0xff] %v1198_v30  ;;  %v2000_v33 = vpop.f32.mrb[10].mxu1  ;;  %v1565_v14 = vrot.slane (!%p1771_p13), %v1559_v8, %v2470_v19  ;;  %2127 = vmatpush3.bf16.msra.mxu1 (!%p1771_p13), %v1812_v22  ;;  %v1262_v30 = vmul.f32 (!%p1771_p13), %v2523_v3, %v1240_v28  ;;  %v1307_v6 = vld [vmem:[#allocation3 + $0x8] sm:$0xff] (!%p1771_p13)  ;;  %v1306_v7 = vld [vmem:[#allocation3] sm:$0xff] (!%p1771_p13) }
 0x48a   : > { %v1201_v36 = vadd.f32 %v2000_v33, %v957_v31  ;;  %v1161_v37 = vpop.f32.mrb[11].mxu1  ;;  %v1580_v18 = vrot.slane (!%p1771_p13), %v1574_v12, %v2470_v19  ;;  %v1813_v19 = vld [vmem:[%s2622_s4 + $0x28] sm:$0xff] (!%p1771_p13)   ;;  %v1815_v33 = vld [vmem:[%s2622_s4 + $0x38] sm:$0xff] (!%p1771_p13)   ;;  %v1310_v26 = vld [vmem:[#allocation3 + $0x20] sm:$0xff] (!%p1771_p13) }
 0x48b   : > { %v1200_v39 = vadd.f32 %v1161_v37, %v956_v34  ;;  %v1566_v20 = vmul.f32 (!%p1771_p13), %v1565_v14, %v1560_v10  ;;  %v1567_v21 = vmul.f32 (!%p1771_p13), %v1565_v14, %v1561_v11  ;;  %2088 = vmatprep.subr.bf16.mxu0 (!%p1771_p13), %v1813_v19  ;;  %2120 = vmatprep.subr.bf16.mxu1 (!%p1771_p13), %v1813_v19  ;;  %v1241_v31 = vld [vmem:[#allocation6 + $0x28] sm:$0xff] (!%p1771_p13)  ;;  %v1243_v37 = vld [vmem:[#allocation6 + $0x38] sm:$0xff] (!%p1771_p13) }
 0x48c   : > { %1217 = vst [vmem:[#allocation6 + $0x58] sm:$0xff] %v1201_v36  ;;  %v1581_v23 = vmul.f32 (!%p1771_p13), %v1580_v18, %v1575_v15  ;;  %v1582_v24 = vmul.f32 (!%p1771_p13), %v1580_v18, %v1576_v16  ;;  %1323 = vxpose.xlu0.b32.cont [2/16] (!%p1771_p13), %v1259_v13, 128  ;;  %2090 = vmatpush3.bf16.msra.mxu0 (!%p1771_p13), %v1813_v19  ;;  %v1242_v35 = vld [vmem:[#allocation6 + $0x30] sm:$0xff] (!%p1771_p13) }
 0x48d   : > { %1216 = vst [vmem:[#allocation6 + $0x50] sm:$0xff] %v1200_v39  ;;  %v2003_v41 = vpop.f32.mrb[12].mxu1  ;;  %1568 = vst [vmem:[%s2402_s19] sm:$0xff] (!%p1771_p13), %v1566_v20  ;;  %2092 = vmatprep.subr.bf16.mxu0 (!%p1771_p13), %v1814_v29  ;;  %2128 = vmatpush3.bf16.msra.mxu1 (!%p1771_p13), %v1813_v19  ;;  %v1263_v34 = vmul.f32 (!%p1771_p13), %v2523_v3, %v1241_v31  ;;  %v1264_v36 = vmul.f32 (!%p1771_p13), %v2523_v3, %v1242_v35  ;;  %v1309_v15 = vld [vmem:[#allocation3 + $0x18] sm:$0xff] (!%p1771_p13)  ;;  %v1308_v16 = vld [vmem:[#allocation3 + $0x10] sm:$0xff] (!%p1771_p13) }
 0x48e   : > { %v1203_v44 = vadd.f32 %v2003_v41, %v959_v40  ;;  %v1171_v45 = vpop.f32.mrb[13].mxu1  ;;  %1569 = vst [vmem:[%s2402_s19 + $0x8] sm:$0xff] (!%p1771_p13), %v1567_v21  ;;  %1583 = vst [vmem:[%s2402_s19 + $0x10] sm:$0xff] (!%p1771_p13), %v1581_v23  ;;  %2121 = vmatprep.subr.bf16.mxu1 (!%p1771_p13), %v1814_v29  ;;  %v1265_v38 = vmul.f32 (!%p1771_p13), %v2523_v3, %v1243_v37 }
 0x48f   : > { %v1202_v47 = vadd.f32 %v1171_v45, %v958_v42  ;;  %1231 = sbr.rel (%p1771_p13) target bundleno = 1578 (0x62a), region = 52  ;;  %1584 = vst [vmem:[%s2402_s19 + $0x18] sm:$0xff] (!%p1771_p13), %v1582_v24  ;;  %v1245_v41 = vld [vmem:[#allocation6 + $0x48] sm:$0xff] (!%p1771_p13) }
 0x490   : > { %1219 = vst [vmem:[#allocation6 + $0x68] sm:$0xff] %v1203_v44  ;;  %1324 = vxpose.xlu0.b32.cont [3/16] (!%p1771_p13), %v1260_v25, 128  ;;  %2094 = vmatpush3.bf16.msra.mxu0 (!%p1771_p13), %v1814_v29  ;;  %v1244_v39 = vld [vmem:[#allocation6 + $0x40] sm:$0xff] (!%p1771_p13)  ;;  %v1267_v42 = vmul.f32 (!%p1771_p13), %v2523_v3, %v1245_v41 }
 0x491   : > { %1218 = vst [vmem:[#allocation6 + $0x60] sm:$0xff] %v1202_v47  ;;  %v2006_v49 = vpop.f32.mrb[14].mxu1  ;;  %2096 = vmatprep.subr.bf16.mxu0 (!%p1771_p13), %v1815_v33  ;;  %2129 = vmatpush3.bf16.msra.mxu1 (!%p1771_p13), %v1814_v29  ;;  %v1266_v40 = vmul.f32 (!%p1771_p13), %v2523_v3, %v1244_v39  ;;  %v1311_v24 = vld [vmem:[#allocation3 + $0x28] sm:$0xff] (!%p1771_p13) }
 0x492   : > { %v1205_v51 = vadd.f32 %v2006_v49, %v961_v48  ;;  %v1181_v52 = vpop.f32.mrb[15].mxu1  ;;  %2122 = vmatprep.subr.bf16.mxu1 (!%p1771_p13), %v1815_v33 }
 0x493   : > { %v1204_v53 = vadd.f32 %v1181_v52, %v960_v50  ;;  %v1247_v45 = vld [vmem:[#allocation6 + $0x58] sm:$0xff] (!%p1771_p13) }
 0x494   : > { %1221 = vst [vmem:[#allocation6 + $0x78] sm:$0xff] %v1205_v51  ;;  %1325 = vxpose.xlu0.b32.cont [4/16] (!%p1771_p13), %v1261_v27, 128  ;;  %2098 = vmatpush3.bf16.msra.mxu0 (!%p1771_p13), %v1815_v33  ;;  %v1246_v43 = vld [vmem:[#allocation6 + $0x50] sm:$0xff] (!%p1771_p13)  ;;  %v1269_v46 = vmul.f32 (!%p1771_p13), %v2523_v3, %v1247_v45 }
 0x495   : > { %1220 = vst [vmem:[#allocation6 + $0x70] sm:$0xff] %v1204_v53  ;;  %2130 = vmatpush3.bf16.msra.mxu1 (!%p1771_p13), %v1815_v33  ;;  %v1268_v44 = vmul.f32 (!%p1771_p13), %v2523_v3, %v1246_v43 }
 0x497   : > { %v1249_v49 = vld [vmem:[#allocation6 + $0x68] sm:$0xff] }
 0x498   : > { %1326 = vxpose.xlu0.b32.cont [5/16] %v1262_v30, 128  ;;  %v1248_v47 = vld [vmem:[#allocation6 + $0x60] sm:$0xff]  ;;  %v1271_v50 = vmul.f32 %v2523_v3, %v1249_v49 }
 0x499   : > { %v1270_v48 = vmul.f32 %v2523_v3, %v1248_v47 }
 0x49b   : > { %v1251_v53 = vld [vmem:[#allocation6 + $0x78] sm:$0xff] }
 0x49c   : > { %1327 = vxpose.xlu0.b32.cont [6/16] %v1263_v34, 128  ;;  %v1250_v51 = vld [vmem:[#allocation6 + $0x70] sm:$0xff]  ;;  %v1273_v54 = vmul.f32 %v2523_v3, %v1251_v53 }
 0x49d   : > { %v1272_v52 = vmul.f32 %v2523_v3, %v1250_v51  ;;  %v1313_v34 = vld [vmem:[#allocation3 + $0x38] sm:$0xff] }
 0x4a0   : > { %1328 = vxpose.xlu0.b32.cont [7/16] %v1264_v36, 128  ;;  %v1312_v36 = vld [vmem:[#allocation3 + $0x30] sm:$0xff] }
 0x4a4   : > { %1329 = vxpose.xlu0.b32.cont [8/16] %v1265_v38, 128 }
 0x4a8   : > { %1330 = vxpose.xlu0.b32.cont [9/16] %v1266_v40, 128 }
 0x4ac   : > { %1331 = vxpose.xlu0.b32.cont [10/16] %v1267_v42, 128 }
 0x4b0   : > { %1332 = vxpose.xlu0.b32.cont [11/16] %v1268_v44, 128  ;;  %v1315_v44 = vld [vmem:[#allocation3 + $0x48] sm:$0xff] }
 0x4b4   : > { %1333 = vxpose.xlu0.b32.cont [12/16] %v1269_v46, 128  ;;  %v1314_v46 = vld [vmem:[#allocation3 + $0x40] sm:$0xff] }
 0x4b8   : > { %1334 = vxpose.xlu0.b32.cont [13/16] %v1270_v48, 128 }
 0x4bc   : > { %1335 = vxpose.xlu0.b32.cont [14/16] %v1271_v50, 128 }
 0x4c0   : > { %1336 = vxpose.xlu0.b32.cont [15/16] %v1272_v52, 128 }
 0x4c4   : > { %1337 = vxpose.xlu0.b32.end [16/16] %v1273_v54, 128  ;;  %v1317_v54 = vld [vmem:[#allocation3 + $0x58] sm:$0xff] }
 0x508   : > { %v1338_v55 = vpop.trf.xlu0 }
 0x509   : > { %2039 = vmatprep.mubr.f32.mxu0 %v1338_v55 }
 0x50c   : > { %v1339_v56 = vpop.trf.xlu0 }
 0x50d   : > { %2040 = vmatmul.mubr.f32.vlgmr.msra.gmra.mrb[0].mxu0 %v1339_v56  ;;  %v1316_v56 = vld [vmem:[#allocation3 + $0x50] sm:$0xff] }
 0x510   : > { %v1340_v57 = vpop.trf.xlu0 }
 0x511   : > { %2042 = vmatprep.mubr.f32.mxu0 %v1340_v57 }
 0x514   : > { %v1341_v58 = vpop.trf.xlu0 }
 0x515   : > { %2043 = vmatmul.mubr.f32.gmra.mrb[2].mxu0 %v1341_v58 }
 0x518   : > { %v1342_v59 = vpop.trf.xlu0 }
 0x519   : > { %2045 = vmatprep.mubr.f32.mxu0 %v1342_v59 }
 0x51c   : > { %v1343_v60 = vpop.trf.xlu0 }
 0x51d   : > { %2046 = vmatmul.mubr.f32.gmra.mrb[4].mxu0 %v1343_v60 }
 0x520   : > { %v1344_v61 = vpop.trf.xlu0 }
 0x521   : > { %2048 = vmatprep.mubr.f32.mxu0 %v1344_v61 }
 0x524   : > { %v1345_v62 = vpop.trf.xlu0 }
 0x525   : > { %2049 = vmatmul.mubr.f32.gmra.mrb[6].mxu0 %v1345_v62 }
 0x528   : > { %v1346_v32 = vpop.trf.xlu0 }
 0x529   : > { %2051 = vmatprep.mubr.f32.mxu1 %v1346_v32 }
 0x52c   : > { %v1347_v63 = vpop.trf.xlu0 }
 0x52d   : > { %2052 = vmatmul.mubr.f32.vlgmr.msra.gmra.mrb[0].mxu1 %v1347_v63  ;;  %v1319_v63 = vld [vmem:[#allocation3 + $0x68] sm:$0xff] }
 0x530   : > { %v1348_v0 = vpop.trf.xlu0 }
 0x531   : > { %2054 = vmatprep.mubr.f32.mxu1 %v1348_v0 }
 0x534   : > { %v1349_v1 = vpop.trf.xlu0 }
 0x535   : > { %2055 = vmatmul.mubr.f32.gmra.mrb[2].mxu1 %v1349_v1  ;;  %v1318_v1 = vld [vmem:[#allocation3 + $0x60] sm:$0xff] }
 0x538   : > { %v1350_v2 = vpop.trf.xlu0 }
 0x539   : > { %2057 = vmatprep.mubr.f32.mxu1 %v1350_v2 }
 0x53c   : > { %v1351_v3 = vpop.trf.xlu0 }
 0x53d   : > { %2058 = vmatmul.mubr.f32.gmra.mrb[4].mxu1 %v1351_v3 }
 0x540   : > { %v1352_v4 = vpop.trf.xlu0 }
 0x541   : > { %2060 = vmatprep.mubr.f32.mxu1 %v1352_v4 }
 0x544   : > { %v1353_v5 = vpop.trf.xlu0 }
 0x545   : > { %2061 = vmatmul.mubr.f32.gmra.mrb[6].mxu1 %v1353_v5 }
 0x5e0   : > { %v2041_v8 = vpop.f32.mrb[0].mxu0 }
 0x5e1   : > { %v1426_v10 = vadd.f32 %v2041_v8, %v1307_v6  ;;  %v1420_v11 = vpop.f32.mrb[1].mxu0 }
 0x5e2   : > { %v1421_v12 = vadd.f32 %v1420_v11, %v1306_v7 }
 0x5e3   : > { %v1507_v13 = vadd.f32 %v2569_v9, %v1426_v10  ;;  %v1321_v10 = vld [vmem:[#allocation3 + $0x78] sm:$0xff] }
 0x5e4   : > { %v1506_v14 = vadd.f32 %v2569_v9, %v1421_v12  ;;  %v1320_v12 = vld [vmem:[#allocation3 + $0x70] sm:$0xff] }
 0x5e5   : > { %2203 = vtanh.f32 %v1507_v13 }
 0x5e6   : > { %2205 = vtanh.f32 %v1506_v14 }
 0x5e8   : > { %v2044_v17 = vpop.f32.mrb[2].mxu0 }
 0x5e9   : > { %v1436_v18 = vadd.f32 %v2044_v17, %v1309_v15  ;;  %v1430_v20 = vpop.f32.mrb[3].mxu0 }
 0x5ea   : > { %v1431_v21 = vadd.f32 %v1430_v20, %v1308_v16 }
 0x5eb   : > { %v1509_v22 = vadd.f32 %v2569_v9, %v1436_v18 }
 0x5ec   : > { %v1508_v23 = vadd.f32 %v2569_v9, %v1431_v21 }
 0x5ed   : > { %2207 = vtanh.f32 %v1509_v22 }
 0x5ee   : > { %2209 = vtanh.f32 %v1508_v23 }
 0x5ef   : > { %v2204_v25 = vpop.eup %2203 }
 0x5f0   : > { %v2206_v19 = vpop.eup %2205  ;;  %1539 = vst [vmem:[%s2391_s27 + $0x8] sm:$0xff] %v2204_v25  ;;  %v2047_v27 = vpop.f32.mrb[4].mxu0 }
 0x5f1   : > { %1538 = vst [vmem:[%s2391_s27] sm:$0xff] %v2206_v19  ;;  %v1446_v28 = vadd.f32 %v2047_v27, %v1311_v24  ;;  %v1440_v29 = vpop.f32.mrb[5].mxu0 }
 0x5f2   : > { %v1441_v30 = vadd.f32 %v1440_v29, %v1310_v26 }
 0x5f3   : > { %v1511_v31 = vadd.f32 %v2569_v9, %v1446_v28 }
 0x5f4   : > { %v1510_v33 = vadd.f32 %v2569_v9, %v1441_v30 }
 0x5f5   : > { %2211 = vtanh.f32 %v1511_v31 }
 0x5f6   : > { %2213 = vtanh.f32 %v1510_v33 }
 0x5f7   : > { %v2208_v35 = vpop.eup %2207 }
 0x5f8   : > { %v2210_v37 = vpop.eup %2209  ;;  %1541 = vst [vmem:[%s2391_s27 + $0x18] sm:$0xff] %v2208_v35  ;;  %v2050_v38 = vpop.f32.mrb[6].mxu0 }
 0x5f9   : > { %1540 = vst [vmem:[%s2391_s27 + $0x10] sm:$0xff] %v2210_v37  ;;  %v1456_v39 = vadd.f32 %v2050_v38, %v1313_v34  ;;  %v1450_v40 = vpop.f32.mrb[7].mxu0 }
 0x5fa   : > { %v1451_v41 = vadd.f32 %v1450_v40, %v1312_v36 }
 0x5fb   : > { %v1513_v42 = vadd.f32 %v2569_v9, %v1456_v39 }
 0x5fc   : > { %v1512_v43 = vadd.f32 %v2569_v9, %v1451_v41 }
 0x5fd   : > { %2215 = vtanh.f32 %v1513_v42 }
 0x5fe   : > { %2217 = vtanh.f32 %v1512_v43 }
 0x5ff   : > { %v2212_v45 = vpop.eup %2211 }
 0x600   : > { %v2214_v47 = vpop.eup %2213  ;;  %1543 = vst [vmem:[%s2391_s27 + $0x28] sm:$0xff] %v2212_v45  ;;  %v2053_v48 = vpop.f32.mrb[0].mxu1 }
 0x601   : > { %1542 = vst [vmem:[%s2391_s27 + $0x20] sm:$0xff] %v2214_v47  ;;  %v1466_v49 = vadd.f32 %v2053_v48, %v1315_v44  ;;  %v1460_v50 = vpop.f32.mrb[1].mxu1 }
 0x602   : > { %v1461_v51 = vadd.f32 %v1460_v50, %v1314_v46 }
 0x603   : > { %v1515_v52 = vadd.f32 %v2569_v9, %v1466_v49 }
 0x604   : > { %v1514_v53 = vadd.f32 %v2569_v9, %v1461_v51 }
 0x605   : > { %2219 = vtanh.f32 %v1515_v52 }
 0x606   : > { %2221 = vtanh.f32 %v1514_v53 }
 0x607   : > { %v2216_v55 = vpop.eup %2215 }
 0x608   : > { %v2218_v57 = vpop.eup %2217  ;;  %1545 = vst [vmem:[%s2391_s27 + $0x38] sm:$0xff] %v2216_v55  ;;  %v2056_v58 = vpop.f32.mrb[2].mxu1 }
 0x609   : > { %1544 = vst [vmem:[%s2391_s27 + $0x30] sm:$0xff] %v2218_v57  ;;  %v1476_v59 = vadd.f32 %v2056_v58, %v1317_v54  ;;  %v1470_v60 = vpop.f32.mrb[3].mxu1 }
 0x60a   : > { %v1471_v61 = vadd.f32 %v1470_v60, %v1316_v56 }
 0x60b   : > { %v1517_v62 = vadd.f32 %v2569_v9, %v1476_v59 }
 0x60c   : > { %v1516_v32 = vadd.f32 %v2569_v9, %v1471_v61 }
 0x60d   : > { %2223 = vtanh.f32 %v1517_v62 }
 0x60e   : > { %2225 = vtanh.f32 %v1516_v32 }
 0x60f   : > { %v2220_v0 = vpop.eup %2219 }
 0x610   : > { %v2222_v2 = vpop.eup %2221  ;;  %1547 = vst [vmem:[%s2391_s27 + $0x48] sm:$0xff] %v2220_v0  ;;  %v2059_v3 = vpop.f32.mrb[4].mxu1 }
 0x611   : > { %1546 = vst [vmem:[%s2391_s27 + $0x40] sm:$0xff] %v2222_v2  ;;  %v1486_v4 = vadd.f32 %v2059_v3, %v1319_v63  ;;  %v1480_v5 = vpop.f32.mrb[5].mxu1 }
 0x612   : > { %v1481_v6 = vadd.f32 %v1480_v5, %v1318_v1 }
 0x613   : > { %v1519_v7 = vadd.f32 %v2569_v9, %v1486_v4 }
 0x614   : > { %v1518_v8 = vadd.f32 %v2569_v9, %v1481_v6 }
 0x615   : > { %2227 = vtanh.f32 %v1519_v7 }
 0x616   : > { %2229 = vtanh.f32 %v1518_v8 }
 0x617   : > { %v2224_v11 = vpop.eup %2223 }
 0x618   : > { %v2226_v13 = vpop.eup %2225  ;;  %1549 = vst [vmem:[%s2391_s27 + $0x58] sm:$0xff] %v2224_v11  ;;  %v2062_v14 = vpop.f32.mrb[6].mxu1 }
 0x619   : > { %1548 = vst [vmem:[%s2391_s27 + $0x50] sm:$0xff] %v2226_v13  ;;  %v1496_v15 = vadd.f32 %v2062_v14, %v1321_v10  ;;  %v1490_v16 = vpop.f32.mrb[7].mxu1 }
 0x61a   : > { %v1491_v17 = vadd.f32 %v1490_v16, %v1320_v12 }
 0x61b   : > { %v1521_v18 = vadd.f32 %v2569_v9, %v1496_v15 }
 0x61c   : > { %v1520_v20 = vadd.f32 %v2569_v9, %v1491_v17 }
 0x61d   : > { %2231 = vtanh.f32 %v1521_v18 }
 0x61e   : > { %2233 = vtanh.f32 %v1520_v20 }
 0x61f   : > { %v2228_v21 = vpop.eup %2227 }
 0x620   : > { %v2230_v22 = vpop.eup %2229  ;;  %1551 = vst [vmem:[%s2391_s27 + $0x68] sm:$0xff] %v2228_v21 }
 0x621   : > { %1550 = vst [vmem:[%s2391_s27 + $0x60] sm:$0xff] %v2230_v22 }
 0x627   : > { %v2232_v23 = vpop.eup %2231 }
 0x628   : > { %v2234_v24 = vpop.eup %2233  ;;  %1553 = vst [vmem:[%s2391_s27 + $0x78] sm:$0xff] %v2232_v23 }
 0x629   : > { %1552 = vst [vmem:[%s2391_s27 + $0x70] sm:$0xff] %v2234_v24 }
 0x62a PF: > { %s26_s17 = sadd.s32 1, %s2287_s17   ;;  %s2632_s15 = sld [smem:[#allocation11_spill]] }
 0x62b   : > { %p23_p0 = scmp.ge.s32.totalorder %s26_s17, 6   ;;  %s2633_s20 = sld [smem:[#allocation12_spill]] }
 0x62c   : > { %s2634_s0 = sld [smem:[#allocation13_spill]]  ;;  %s2635_s14 = smov %s2279_s16 }
 0x62d   :  { %25 = sbr.rel (!%p23_p0) target bundleno = 18 (0x12), region = 109 }
 0x631   : > { %s2636_s16 = smov %s2633_s20 }

</bundles_post_ra>
